<compile_context>
chip_gen: v6e
topology: v6e:2x2x1
jax: 0.10.0
libtpu: 0.0.40
codegen_flags: <defaults>
</compile_context>

<pallas_src>
import functools
import numpy as np
import jax
import jax.numpy as jnp
from jax import lax
from jax.experimental import pallas as pl
from jax.experimental.pallas import tpu as pltpu

PAD = 0
LN_EPS = 1e-5
NEG_INF = -1e9            # finite mask value (avoids -inf - (-inf) = NaN)


# ---------------------------------------------------------------------------
# Sinusoid positional table (exactly as the PyTorch reference)
# ---------------------------------------------------------------------------
def get_sinusoid_encoding_table(n_position, d_hid, padding_idx=None):
    def cal_angle(position, hid_idx):
        return position / np.power(10000, 2 * (hid_idx // 2) / d_hid)

    def get_posi_angle_vec(position):
        return [cal_angle(position, hid_j) for hid_j in range(d_hid)]

    table = np.array([get_posi_angle_vec(p) for p in range(n_position)])
    table[:, 0::2] = np.sin(table[:, 0::2])
    table[:, 1::2] = np.cos(table[:, 1::2])
    if padding_idx is not None:
        table[padding_idx] = 0.0
    return jnp.asarray(table, dtype=jnp.float32)


def _layer_norm(x, gamma, beta):
    mean = jnp.mean(x, axis=-1, keepdims=True)
    var = jnp.mean((x - mean) ** 2, axis=-1, keepdims=True)
    return (x - mean) * lax.rsqrt(var + LN_EPS) * gamma + beta


# ---------------------------------------------------------------------------
# Fused encoder-layer kernel.  grid = (batch, query-tile).
# The pl.when(q == 0) K/V rebuild relies on the query-tile axis being the
# innermost "arbitrary" axis and batch being revisited contiguously per core.
# ---------------------------------------------------------------------------
def encoder_layer_kernel(xf_ref, kb_ref,
                         wq_ref, bq_ref, wk_ref, bk_ref, wv_ref, bv_ref,
                         wo_ref, bo_ref, g1_ref, be1_ref,
                         w1_ref, b1_ref, w2_ref, b2_ref, g2_ref, be2_ref,
                         *rest, tq, n_head, d_k, d_v, fuse_final):
    if fuse_final:
        np_ref, fw_ref, fb_ref, out_ref, k_scr, v_scr, o_scr = rest
    else:
        out_ref, k_scr, v_scr, o_scr = rest

    L = xf_ref.shape[1]

    # ---- (re)build K / V of the full sequence at the first query tile -------
    # single wide matmuls: (L, D) @ (D, H*d_k/H*d_v), full lane width, lane-dense
    # unmasked stores into the scratch.
    @pl.when(pl.program_id(1) == 0)
    def _():
        xf = xf_ref[0]                                           # (L, D) bf16
        k_scr[...] = (jnp.dot(xf, wk_ref[...], preferred_element_type=jnp.float32)
                      + bk_ref[...]).astype(k_scr.dtype)
        v_scr[...] = (jnp.dot(xf, wv_ref[...], preferred_element_type=jnp.float32)
                      + bv_ref[...]).astype(v_scr.dtype)

    # ---- query tile: slice from the already-resident full-sequence block ----
    qs = pl.multiple_of(pl.program_id(1) * tq, tq)
    xq = xf_ref[0, pl.ds(qs, tq), :]                             # (TQ, D) bf16

    # additive key-pad bias, broadcast ONCE (hoisted out of the head loop)
    kb = jnp.broadcast_to(kb_ref[0], (tq, L))                    # (TQ, L) f32

    # ---- fused Q projection for all heads (1/sqrt(d_k) folded into Wq/bq) ---
    q_all = (jnp.dot(xq, wq_ref[...], preferred_element_type=jnp.float32)
             + bq_ref[...]).astype(jnp.bfloat16)                 # (TQ, H*d_k)

    # ---- per-head attention: scores / softmax / PV ---------------------------
    for h in range(n_head):                                      # static unroll
        qh = q_all[:, h * d_k:(h + 1) * d_k]                     # (TQ, d_k) bf16
        kh = k_scr[:, h * d_k:(h + 1) * d_k]                     # (L,  d_k) bf16
        s = lax.dot_general(qh, kh, (((1,), (1,)), ((), ())),
                            preferred_element_type=jnp.float32) + kb      # (TQ, L)
        s = s - jnp.max(s, axis=-1, keepdims=True)
        p = jnp.exp(s)
        p = p * pl.reciprocal(jnp.sum(p, axis=-1, keepdims=True), approx=True)
        oh = jnp.dot(p.astype(jnp.bfloat16), v_scr[:, h * d_v:(h + 1) * d_v],
                     preferred_element_type=jnp.float32)         # (TQ, d_v)
        o_scr[:, h * d_v:(h + 1) * d_v] = oh.astype(o_scr.dtype)

    # ---- single wide output projection: (TQ, H*d_v) @ (H*d_v, D) ------------
    attn = jnp.dot(o_scr[...], wo_ref[...],
                   preferred_element_type=jnp.float32) + bo_ref[...]
    x1 = _layer_norm(attn + xq.astype(jnp.float32), g1_ref[...], be1_ref[...])

    # ---- Position-wise feed forward (Conv1d k=1 == Linear) ------------------
    h1 = jnp.maximum(jnp.dot(x1.astype(jnp.bfloat16), w1_ref[...],
                             preferred_element_type=jnp.float32) + b1_ref[...], 0.0)
    h2 = jnp.dot(h1.astype(jnp.bfloat16), w2_ref[...],
                 preferred_element_type=jnp.float32) + b2_ref[...]
    y = _layer_norm(h2 + x1, g2_ref[...], be2_ref[...])

    if fuse_final:
        # PAD-row zeroing (deferred from every sub-layer; provably equivalent:
        # attention masks PAD keys, LN/FFN/residual are row-local) + final Linear.
        y = y * np_ref[0]                                        # (TQ, D) * (TQ, 1)
        out_ref[0] = (jnp.dot(y.astype(jnp.bfloat16), fw_ref[...],
                              preferred_element_type=jnp.float32) + fb_ref[...])
    else:
        out_ref[0] = y.astype(out_ref.dtype)


# ---------------------------------------------------------------------------
# Wrappers calling pallas_call
# ---------------------------------------------------------------------------
def _pick_q_tile(L):
    # MXU-matched query tiles: 256 for v6e/v7x, 128 for v5e; never below 16
    # (bf16 packs (16, 128) per vreg).  Falls back to full L for odd sizes.
    for cand in (256, 128, 64, 32, 16):
        if L % cand == 0:
            return cand
    return L


def _const_spec(a):
    """Constant-index (weight/bias) BlockSpec, single-buffered where supported."""
    idx_map = lambda b, q: (0,) * a.ndim
    buffered = getattr(pl, "Buffered", None)
    if buffered is not None:
        try:
            return pl.BlockSpec(a.shape, idx_map, pipeline_mode=buffered(1))
        except TypeError:      # older jax without pipeline_mode kwarg
            pass
    return pl.BlockSpec(a.shape, idx_map)


def run_encoder_layer(x, key_bias, layer_params, *, n_head, d_k, d_v, q_tile=None,
                      non_pad=None, final_w=None, final_b=None):
    """One fused encoder layer; if final_w is given, also fuses non_pad masking
    and the final Linear(d_model, 512) into the same pallas_call."""
    B, L, D = x.shape
    tq = q_tile or _pick_q_tile(L)
    assert L % tq == 0
    nq = L // tq
    fuse_final = final_w is not None

    in_specs = [
        pl.BlockSpec((1, L, D), lambda b, q: (b, 0, 0)),    # full x per batch (K/V + query slicing)
        pl.BlockSpec((1, 1, L), lambda b, q: (b, 0, 0)),    # additive key-pad bias (lane-dense)
    ] + [_const_spec(p) for p in layer_params]
    inputs = [x, key_bias, *layer_params]

    if fuse_final:
        d_out = final_w.shape[1]
        in_specs += [pl.BlockSpec((1, tq, 1), lambda b, q: (b, q, 0)),   # non_pad rows
                     _const_spec(final_w), _const_spec(final_b)]
        inputs += [non_pad, final_w, final_b]
        out_shape = jax.ShapeDtypeStruct((B, L, d_out), jnp.float32)
        out_spec = pl.BlockSpec((1, tq, d_out), lambda b, q: (b, q, 0))
    else:
        out_shape = jax.ShapeDtypeStruct((B, L, D), jnp.bfloat16)
        out_spec = pl.BlockSpec((1, tq, D), lambda b, q: (b, q, 0))

    kernel = functools.partial(encoder_layer_kernel, tq=tq, n_head=n_head,
                               d_k=d_k, d_v=d_v, fuse_final=fuse_final)
    return pl.pallas_call(
        kernel,
        out_shape=out_shape,
        grid=(B, nq),
        in_specs=in_specs,
        out_specs=out_spec,
        scratch_shapes=[pltpu.VMEM((L, n_head * d_k), jnp.bfloat16),   # K (all heads, lane-dense)
                        pltpu.VMEM((L, n_head * d_v), jnp.bfloat16),   # V (all heads, lane-dense)
                        pltpu.VMEM((tq, n_head * d_v), jnp.bfloat16)], # concat(head outputs)
        compiler_params=pltpu.CompilerParams(
            dimension_semantics=("parallel", "arbitrary"),
            # explicit scoped-VMEM limit (leave headroom vs. v7x's 64 MiB physical)
            vmem_limit_bytes=64 * 1024 * 1024),
    )(*inputs)


# ---------------------------------------------------------------------------
# Parameters (reference layout) + kernel-layout conversion
# ---------------------------------------------------------------------------
def init_encoder_params(key, n_src_vocab, len_max_seq, d_word_vec,
                        n_layers, n_head, d_k, d_v, d_model, d_inner):
    s = 0.1
    keys = jax.random.split(key, 3 + n_layers)

    word_emb = s * jax.random.normal(keys[0], (n_src_vocab, d_word_vec), jnp.float32)
    word_emb = word_emb.at[PAD].set(0.0)                       # padding_idx=PAD
    pos_enc = get_sinusoid_encoding_table(len_max_seq + 1, d_word_vec, padding_idx=0)

    def dense(k, shape):     # weights stored in bf16
        return (s * jax.random.normal(k, shape, jnp.float32)).astype(jnp.bfloat16)

    def small(k, shape):     # biases / LN params stay f32
        return 0.05 * jax.random.normal(k, shape, jnp.float32)

    layers = []
    for li in range(n_layers):
        lk = jax.random.split(keys[3 + li], 16)
        layers.append(dict(
            wq=dense(lk[0], (d_model, n_head * d_k)), bq=small(lk[1], (n_head * d_k,)),
            wk=dense(lk[2], (d_model, n_head * d_k)), bk=small(lk[3], (n_head * d_k,)),
            wv=dense(lk[4], (d_model, n_head * d_v)), bv=small(lk[5], (n_head * d_v,)),
            wo=dense(lk[6], (n_head * d_v, d_model)), bo=small(lk[7], (d_model,)),
            g1=1.0 + small(lk[8], (d_model,)),        be1=small(lk[9], (d_model,)),
            w1=dense(lk[10], (d_model, d_inner)),     b1=small(lk[11], (d_inner,)),
            w2=dense(lk[12], (d_inner, d_model)),     b2=small(lk[13], (d_model,)),
            g2=1.0 + small(lk[14], (d_model,)),       be2=small(lk[15], (d_model,)),
        ))
    final_w = dense(keys[1], (d_model, 512))
    final_b = small(keys[2], (512,))
    return dict(word_emb=word_emb, pos_enc=pos_enc, layers=layers,
                final_w=final_w, final_b=final_b)


def make_kernel_params(params, n_head, d_k, d_v):
    """Flat (fused-head) kernel layout; fold 1/sqrt(d_k) into Wq/bq."""
    scale = 1.0 / np.sqrt(d_k)
    row = lambda b: b.reshape(1, -1).astype(jnp.float32)
    layers = []
    for p in params["layers"]:
        layers.append((
            (p["wq"].astype(jnp.float32) * scale).astype(jnp.bfloat16),   # (D, H*d_k)
            row(p["bq"] * scale),
            p["wk"], row(p["bk"]),                                        # (D, H*d_k)
            p["wv"], row(p["bv"]),                                        # (D, H*d_v)
            p["wo"], row(p["bo"]),                                        # (H*d_v, D)
            row(p["g1"]), row(p["be1"]),
            p["w1"], row(p["b1"]),
            p["w2"], row(p["b2"]),
            row(p["g2"]), row(p["be2"]),
        ))
    return dict(layers=layers,
                final_w=params["final_w"],
                final_b=params["final_b"].reshape(1, -1).astype(jnp.float32))


# ---------------------------------------------------------------------------
# Encoder forward (embedding gathers are plain-JAX glue)
# ---------------------------------------------------------------------------
def encoder_forward(params, kparams, src_seq, src_pos, *, n_head, d_k, d_v, q_tile=None):
    B, L = src_seq.shape
    # additive key-padding bias: NEG_INF on PAD keys, 0 elsewhere (finite -> no NaN)
    key_bias = jnp.where(src_seq == PAD, NEG_INF, 0.0).astype(jnp.float32).reshape(B, 1, L)
    non_pad = (src_seq != PAD).astype(jnp.float32)[:, :, None]              # (B, L, 1)

    enc = params["word_emb"][src_seq] + params["pos_enc"][src_pos]          # (B, L, D) f32
    enc = enc.astype(jnp.bfloat16)

    n_layers = len(kparams["layers"])
    for li, layer_params in enumerate(kparams["layers"]):
        last = li == n_layers - 1
        enc = run_encoder_layer(
            enc, key_bias, layer_params,
            n_head=n_head, d_k=d_k, d_v=d_v, q_tile=q_tile,
            non_pad=non_pad if last else None,
            final_w=kparams["final_w"] if last else None,
            final_b=kparams["final_b"] if last else None)
        # TODO(synk): fuse all layers into one pallas_call with a "layer" grid axis
        # over stacked weights (activation held in VMEM) to drop HBM round trips.
    return enc


# ---------------------------------------------------------------------------
# Pure-JAX reference (faithful to the PyTorch module, f32 math, same bf16 weights)
# ---------------------------------------------------------------------------
def encoder_reference(params, src_seq, src_pos, n_head, d_k, d_v):
    B, L = src_seq.shape
    key_pad = (src_seq == PAD)[:, None, None, :]                       # (B,1,1,L)
    non_pad = (src_seq != PAD).astype(jnp.float32)[:, :, None]         # (B,L,1)
    x = params["word_emb"][src_seq] + params["pos_enc"][src_pos]
    temperature = np.sqrt(d_k)
    f32 = lambda w: w.astype(jnp.float32)

    def ln(v, g, b):
        m = v.mean(-1, keepdims=True)
        var = ((v - m) ** 2).mean(-1, keepdims=True)
        return (v - m) / jnp.sqrt(var + LN_EPS) * g + b

    for p in params["layers"]:
        res = x
        q = (x @ f32(p["wq"]) + p["bq"]).reshape(B, L, n_head, d_k)
        k = (x @ f32(p["wk"]) + p["bk"]).reshape(B, L, n_head, d_k)
        v = (x @ f32(p["wv"]) + p["bv"]).reshape(B, L, n_head, d_v)
        s = jnp.einsum("blhd,bmhd->bhlm", q, k) / temperature
        s = jnp.where(key_pad, NEG_INF, s)
        a = jax.nn.softmax(s, axis=-1)
        o = jnp.einsum("bhlm,bmhd->blhd", a, v).reshape(B, L, n_head * d_v)
        x = ln(o @ f32(p["wo"]) + p["bo"] + res, p["g1"], p["be1"]) * non_pad
        x = ln(jnp.maximum(x @ f32(p["w1"]) + p["b1"], 0.0) @ f32(p["w2"])
               + p["b2"] + x, p["g2"], p["be2"]) * non_pad
    return x @ f32(params["final_w"]) + params["final_b"]


# ---------------------------------------------------------------------------
if __name__ == "__main__":
    # small, lane-friendly config
    n_src_vocab, len_max_seq = 16, 32
    d_word_vec = d_model = 128
    n_layers, n_head, d_k, d_v, d_inner = 2, 4, 32, 32, 256
    B, L = 2, 32
    q_tile = 16          # >= 16 (bf16 packing); 2 query tiles exercise the K/V-reuse path

    key = jax.random.PRNGKey(0)
    k_tok, k_par = jax.random.split(key)

    # deterministic token ids in [1, vocab), with trailing PAD tokens
    tok = jax.random.randint(k_tok, (B, L), 1, n_src_vocab, dtype=jnp.int32)
    lengths = jnp.array([27, 32], dtype=jnp.int32)
    pos_idx = jnp.arange(L, dtype=jnp.int32)[None, :]
    valid = pos_idx < lengths[:, None]
    src_seq = jnp.where(valid, tok, PAD)
    src_pos = jnp.where(valid, pos_idx + 1, 0).astype(jnp.int32)      # 1..len, 0 for pad

    params = init_encoder_params(k_par, n_src_vocab, len_max_seq, d_word_vec,
                                 n_layers, n_head, d_k, d_v, d_model, d_inner)
    kparams = make_kernel_params(params, n_head, d_k, d_v)

    out = encoder_forward(params, kparams, src_seq, src_pos,
                          n_head=n_head, d_k=d_k, d_v=d_v, q_tile=q_tile)
    out = jax.block_until_ready(out)

    ref = encoder_reference(params, src_seq, src_pos, n_head, d_k, d_v)
    np.testing.assert_allclose(np.asarray(out), np.asarray(ref, dtype=np.float32),
                               rtol=3e-2, atol=3e-2)

    print("KERNEL_OK")
</pallas_src>

<mosaic_0001>
module attributes {stable_mosaic.version = 11 : i64} {
  func.func @encoder_layer_kernel(%arg0: i32, %arg1: i32, %arg2: memref<1x32x128xbf16, #tpu.memory_space<vmem>>, %arg3: memref<1x1x32xf32, #tpu.memory_space<vmem>>, %arg4: memref<128x128xbf16, #tpu.memory_space<vmem>>, %arg5: memref<1x128xf32, #tpu.memory_space<vmem>>, %arg6: memref<128x128xbf16, #tpu.memory_space<vmem>>, %arg7: memref<1x128xf32, #tpu.memory_space<vmem>>, %arg8: memref<128x128xbf16, #tpu.memory_space<vmem>>, %arg9: memref<1x128xf32, #tpu.memory_space<vmem>>, %arg10: memref<128x128xbf16, #tpu.memory_space<vmem>>, %arg11: memref<1x128xf32, #tpu.memory_space<vmem>>, %arg12: memref<1x128xf32, #tpu.memory_space<vmem>>, %arg13: memref<1x128xf32, #tpu.memory_space<vmem>>, %arg14: memref<128x256xbf16, #tpu.memory_space<vmem>>, %arg15: memref<1x256xf32, #tpu.memory_space<vmem>>, %arg16: memref<256x128xbf16, #tpu.memory_space<vmem>>, %arg17: memref<1x128xf32, #tpu.memory_space<vmem>>, %arg18: memref<1x128xf32, #tpu.memory_space<vmem>>, %arg19: memref<1x128xf32, #tpu.memory_space<vmem>>, %arg20: memref<1x16x128xbf16, #tpu.memory_space<vmem>>, %arg21: memref<32x128xbf16, #tpu.memory_space<vmem>>, %arg22: memref<32x128xbf16, #tpu.memory_space<vmem>>, %arg23: memref<16x128xbf16, #tpu.memory_space<vmem>>) attributes {dimension_semantics = [#tpu.dimension_semantics<parallel>, #tpu.dimension_semantics<arbitrary>], iteration_bounds = array<i64: 2, 2>, scalar_prefetch = 0 : i64, scratch_operands = 3 : i64, tpu.core_type = #tpu.core_type<tc>, window_params = [{transform_indices = @transform_0, window_bounds = array<i64: 1, 32, 128>}, {transform_indices = @transform_1, window_bounds = array<i64: 1, 1, 32>}, {pipeline_mode = #tpu.pipeline_mode<synchronous>, transform_indices = @transform_2, window_bounds = array<i64: 128, 128>}, {pipeline_mode = #tpu.pipeline_mode<synchronous>, transform_indices = @transform_3, window_bounds = array<i64: 1, 128>}, {pipeline_mode = #tpu.pipeline_mode<synchronous>, transform_indices = @transform_4, window_bounds = array<i64: 128, 128>}, {pipeline_mode = #tpu.pipeline_mode<synchronous>, transform_indices = @transform_5, window_bounds = array<i64: 1, 128>}, {pipeline_mode = #tpu.pipeline_mode<synchronous>, transform_indices = @transform_6, window_bounds = array<i64: 128, 128>}, {pipeline_mode = #tpu.pipeline_mode<synchronous>, transform_indices = @transform_7, window_bounds = array<i64: 1, 128>}, {pipeline_mode = #tpu.pipeline_mode<synchronous>, transform_indices = @transform_8, window_bounds = array<i64: 128, 128>}, {pipeline_mode = #tpu.pipeline_mode<synchronous>, transform_indices = @transform_9, window_bounds = array<i64: 1, 128>}, {pipeline_mode = #tpu.pipeline_mode<synchronous>, transform_indices = @transform_10, window_bounds = array<i64: 1, 128>}, {pipeline_mode = #tpu.pipeline_mode<synchronous>, transform_indices = @transform_11, window_bounds = array<i64: 1, 128>}, {pipeline_mode = #tpu.pipeline_mode<synchronous>, transform_indices = @transform_12, window_bounds = array<i64: 128, 256>}, {pipeline_mode = #tpu.pipeline_mode<synchronous>, transform_indices = @transform_13, window_bounds = array<i64: 1, 256>}, {pipeline_mode = #tpu.pipeline_mode<synchronous>, transform_indices = @transform_14, window_bounds = array<i64: 256, 128>}, {pipeline_mode = #tpu.pipeline_mode<synchronous>, transform_indices = @transform_15, window_bounds = array<i64: 1, 128>}, {pipeline_mode = #tpu.pipeline_mode<synchronous>, transform_indices = @transform_16, window_bounds = array<i64: 1, 128>}, {pipeline_mode = #tpu.pipeline_mode<synchronous>, transform_indices = @transform_17, window_bounds = array<i64: 1, 128>}, {transform_indices = @transform_18, window_bounds = array<i64: 1, 16, 128>}]} {
    %c0_i32 = arith.constant 0 : i32
    %0 = arith.cmpi eq, %arg1, %c0_i32 : i32
    %1 = arith.extui %0 : i1 to i32
    %c0_i32_0 = arith.constant 0 : i32
    %2 = arith.cmpi ne, %1, %c0_i32_0 : i32
    scf.if %2 {
      %c0_85 = arith.constant 0 : index
      %c0_86 = arith.constant 0 : index
      %c0_87 = arith.constant 0 : index
      %169 = vector.load %arg2[%c0_85, %c0_86, %c0_87] : memref<1x32x128xbf16, #tpu.memory_space<vmem>>, vector<1x32x128xbf16>
      %170 = vector.shape_cast %169 : vector<1x32x128xbf16> to vector<32x128xbf16>
      %c0_88 = arith.constant 0 : index
      %c0_89 = arith.constant 0 : index
      %171 = vector.load %arg6[%c0_88, %c0_89] : memref<128x128xbf16, #tpu.memory_space<vmem>>, vector<128x128xbf16>
      %cst_90 = arith.constant dense<0.000000e+00> : vector<32x128xf32>
      %172 = tpu.matmul %170, %171, %cst_90 {dimension_numbers = #tpu.dot_dimension_numbers<[1], [0], [0], [1], [0, 0, 1, 1], [], []>} : vector<32x128xbf16>, vector<128x128xbf16>, vector<32x128xf32> -> vector<32x128xf32>
      %c0_91 = arith.constant 0 : index
      %c0_92 = arith.constant 0 : index
      %173 = vector.load %arg7[%c0_91, %c0_92] : memref<1x128xf32, #tpu.memory_space<vmem>>, vector<1x128xf32>
      %174 = vector.broadcast %173 : vector<1x128xf32> to vector<32x128xf32>
      %175 = arith.addf %172, %174 : vector<32x128xf32>
      %176 = arith.truncf %175 : vector<32x128xf32> to vector<32x128xbf16>
      %c0_93 = arith.constant 0 : index
      %c0_94 = arith.constant 0 : index
      %177 = vector.load %arg21[%c0_93, %c0_94] : memref<32x128xbf16, #tpu.memory_space<vmem>>, vector<32x128xbf16>
      tpu.vector_store %arg21[%c0_93, %c0_94], %176 {strides = array<i32>} : memref<32x128xbf16, #tpu.memory_space<vmem>>, vector<32x128xbf16>,
      %c0_95 = arith.constant 0 : index
      %c0_96 = arith.constant 0 : index
      %178 = vector.load %arg8[%c0_95, %c0_96] : memref<128x128xbf16, #tpu.memory_space<vmem>>, vector<128x128xbf16>
      %cst_97 = arith.constant dense<0.000000e+00> : vector<32x128xf32>
      %179 = tpu.matmul %170, %178, %cst_97 {dimension_numbers = #tpu.dot_dimension_numbers<[1], [0], [0], [1], [0, 0, 1, 1], [], []>} : vector<32x128xbf16>, vector<128x128xbf16>, vector<32x128xf32> -> vector<32x128xf32>
      %c0_98 = arith.constant 0 : index
      %c0_99 = arith.constant 0 : index
      %180 = vector.load %arg9[%c0_98, %c0_99] : memref<1x128xf32, #tpu.memory_space<vmem>>, vector<1x128xf32>
      %181 = vector.broadcast %180 : vector<1x128xf32> to vector<32x128xf32>
      %182 = arith.addf %179, %181 : vector<32x128xf32>
      %183 = arith.truncf %182 : vector<32x128xf32> to vector<32x128xbf16>
      %c0_100 = arith.constant 0 : index
      %c0_101 = arith.constant 0 : index
      %184 = vector.load %arg22[%c0_100, %c0_101] : memref<32x128xbf16, #tpu.memory_space<vmem>>, vector<32x128xbf16>
      tpu.vector_store %arg22[%c0_100, %c0_101], %183 {strides = array<i32>} : memref<32x128xbf16, #tpu.memory_space<vmem>>, vector<32x128xbf16>,
    } else {
    }
    %c16_i32 = arith.constant 16 : i32
    %3 = arith.muli %arg1, %c16_i32 : i32
    %4 = tpu.assume_multiple %3, 16 : i32
    %c0 = arith.constant 0 : index
    %5 = arith.index_cast %4 : i32 to index
    %c0_1 = arith.constant 0 : index
    %6 = vector.load %arg2[%c0, %5, %c0_1] : memref<1x32x128xbf16, #tpu.memory_space<vmem>>, vector<1x16x128xbf16>
    %7 = vector.shape_cast %6 : vector<1x16x128xbf16> to vector<16x128xbf16>
    %c0_2 = arith.constant 0 : index
    %c0_3 = arith.constant 0 : index
    %c0_4 = arith.constant 0 : index
    %8 = vector.load %arg3[%c0_2, %c0_3, %c0_4] : memref<1x1x32xf32, #tpu.memory_space<vmem>>, vector<1x1x32xf32>
    %9 = vector.shape_cast %8 : vector<1x1x32xf32> to vector<1x32xf32>
    %10 = vector.shape_cast %9 : vector<1x32xf32> to vector<1x32xf32>
    %11 = vector.broadcast %10 : vector<1x32xf32> to vector<16x32xf32>
    %c0_5 = arith.constant 0 : index
    %c0_6 = arith.constant 0 : index
    %12 = vector.load %arg4[%c0_5, %c0_6] : memref<128x128xbf16, #tpu.memory_space<vmem>>, vector<128x128xbf16>
    %cst = arith.constant dense<0.000000e+00> : vector<16x128xf32>
    %13 = tpu.matmul %7, %12, %cst {dimension_numbers = #tpu.dot_dimension_numbers<[1], [0], [0], [1], [0, 0, 1, 1], [], []>} : vector<16x128xbf16>, vector<128x128xbf16>, vector<16x128xf32> -> vector<16x128xf32>
    %c0_7 = arith.constant 0 : index
    %c0_8 = arith.constant 0 : index
    %14 = vector.load %arg5[%c0_7, %c0_8] : memref<1x128xf32, #tpu.memory_space<vmem>>, vector<1x128xf32>
    %15 = vector.broadcast %14 : vector<1x128xf32> to vector<16x128xf32>
    %16 = arith.addf %13, %15 : vector<16x128xf32>
    %17 = arith.truncf %16 : vector<16x128xf32> to vector<16x128xbf16>
    %18 = vector.extract_strided_slice %17 {offsets = [0, 0], sizes = [16, 32], strides = [1, 1]} : vector<16x128xbf16> to vector<16x32xbf16>
    %c0_9 = arith.constant 0 : index
    %c0_10 = arith.constant 0 : index
    %19 = vector.load %arg21[%c0_9, %c0_10] : memref<32x128xbf16, #tpu.memory_space<vmem>>, vector<32x32xbf16>
    %cst_11 = arith.constant dense<0.000000e+00> : vector<16x32xf32>
    %20 = tpu.matmul %18, %19, %cst_11 {dimension_numbers = #tpu.dot_dimension_numbers<[1], [1], [0], [0], [0, 0, 1, 0], [], []>} : vector<16x32xbf16>, vector<32x32xbf16>, vector<16x32xf32> -> vector<16x32xf32>
    %21 = arith.addf %20, %11 : vector<16x32xf32>
    %cst_12 = arith.constant dense<0xFF800000> : vector<16xf32>
    %22 = vector.multi_reduction <maximumf>, %21, %cst_12 [1] : vector<16x32xf32> to vector<16xf32>
    %23 = vector.shape_cast %22 : vector<16xf32> to vector<16x1xf32>
    %24 = vector.broadcast %23 : vector<16x1xf32> to vector<16x32xf32>
    %25 = arith.subf %21, %24 : vector<16x32xf32>
    %26 = math.exp %25 : vector<16x32xf32>
    %cst_13 = arith.constant dense<0.000000e+00> : vector<16xf32>
    %27 = vector.multi_reduction <add>, %26, %cst_13 [1] : vector<16x32xf32> to vector<16xf32>
    %28 = vector.shape_cast %27 : vector<16xf32> to vector<16x1xf32>
    %29 = tpu.reciprocal %28 {approx = true} : vector<16x1xf32> -> vector<16x1xf32>
    %30 = vector.broadcast %29 : vector<16x1xf32> to vector<16x32xf32>
    %31 = arith.mulf %26, %30 : vector<16x32xf32>
    %32 = arith.truncf %31 : vector<16x32xf32> to vector<16x32xbf16>
    %c0_14 = arith.constant 0 : index
    %c0_15 = arith.constant 0 : index
    %33 = vector.load %arg22[%c0_14, %c0_15] : memref<32x128xbf16, #tpu.memory_space<vmem>>, vector<32x32xbf16>
    %cst_16 = arith.constant dense<0.000000e+00> : vector<16x32xf32>
    %34 = tpu.matmul %32, %33, %cst_16 {dimension_numbers = #tpu.dot_dimension_numbers<[1], [0], [0], [1], [0, 0, 1, 1], [], []>} : vector<16x32xbf16>, vector<32x32xbf16>, vector<16x32xf32> -> vector<16x32xf32>
    %35 = arith.truncf %34 : vector<16x32xf32> to vector<16x32xbf16>
    %c0_17 = arith.constant 0 : index
    %c0_18 = arith.constant 0 : index
    %36 = vector.load %arg23[%c0_17, %c0_18] : memref<16x128xbf16, #tpu.memory_space<vmem>>, vector<16x32xbf16>
    tpu.vector_store %arg23[%c0_17, %c0_18], %35 {strides = array<i32>} : memref<16x128xbf16, #tpu.memory_space<vmem>>, vector<16x32xbf16>,
    %37 = vector.extract_strided_slice %17 {offsets = [0, 32], sizes = [16, 32], strides = [1, 1]} : vector<16x128xbf16> to vector<16x32xbf16>
    %c0_19 = arith.constant 0 : index
    %c32 = arith.constant 32 : index
    %38 = vector.load %arg21[%c0_19, %c32] : memref<32x128xbf16, #tpu.memory_space<vmem>>, vector<32x32xbf16>
    %cst_20 = arith.constant dense<0.000000e+00> : vector<16x32xf32>
    %39 = tpu.matmul %37, %38, %cst_20 {dimension_numbers = #tpu.dot_dimension_numbers<[1], [1], [0], [0], [0, 0, 1, 0], [], []>} : vector<16x32xbf16>, vector<32x32xbf16>, vector<16x32xf32> -> vector<16x32xf32>
    %40 = arith.addf %39, %11 : vector<16x32xf32>
    %cst_21 = arith.constant dense<0xFF800000> : vector<16xf32>
    %41 = vector.multi_reduction <maximumf>, %40, %cst_21 [1] : vector<16x32xf32> to vector<16xf32>
    %42 = vector.shape_cast %41 : vector<16xf32> to vector<16x1xf32>
    %43 = vector.broadcast %42 : vector<16x1xf32> to vector<16x32xf32>
    %44 = arith.subf %40, %43 : vector<16x32xf32>
    %45 = math.exp %44 : vector<16x32xf32>
    %cst_22 = arith.constant dense<0.000000e+00> : vector<16xf32>
    %46 = vector.multi_reduction <add>, %45, %cst_22 [1] : vector<16x32xf32> to vector<16xf32>
    %47 = vector.shape_cast %46 : vector<16xf32> to vector<16x1xf32>
    %48 = tpu.reciprocal %47 {approx = true} : vector<16x1xf32> -> vector<16x1xf32>
    %49 = vector.broadcast %48 : vector<16x1xf32> to vector<16x32xf32>
    %50 = arith.mulf %45, %49 : vector<16x32xf32>
    %51 = arith.truncf %50 : vector<16x32xf32> to vector<16x32xbf16>
    %c0_23 = arith.constant 0 : index
    %c32_24 = arith.constant 32 : index
    %52 = vector.load %arg22[%c0_23, %c32_24] : memref<32x128xbf16, #tpu.memory_space<vmem>>, vector<32x32xbf16>
    %cst_25 = arith.constant dense<0.000000e+00> : vector<16x32xf32>
    %53 = tpu.matmul %51, %52, %cst_25 {dimension_numbers = #tpu.dot_dimension_numbers<[1], [0], [0], [1], [0, 0, 1, 1], [], []>} : vector<16x32xbf16>, vector<32x32xbf16>, vector<16x32xf32> -> vector<16x32xf32>
    %54 = arith.truncf %53 : vector<16x32xf32> to vector<16x32xbf16>
    %c0_26 = arith.constant 0 : index
    %c32_27 = arith.constant 32 : index
    %55 = vector.load %arg23[%c0_26, %c32_27] : memref<16x128xbf16, #tpu.memory_space<vmem>>, vector<16x32xbf16>
    tpu.vector_store %arg23[%c0_26, %c32_27], %54 {strides = array<i32>} : memref<16x128xbf16, #tpu.memory_space<vmem>>, vector<16x32xbf16>,
    %56 = vector.extract_strided_slice %17 {offsets = [0, 64], sizes = [16, 32], strides = [1, 1]} : vector<16x128xbf16> to vector<16x32xbf16>
    %c0_28 = arith.constant 0 : index
    %c64 = arith.constant 64 : index
    %57 = vector.load %arg21[%c0_28, %c64] : memref<32x128xbf16, #tpu.memory_space<vmem>>, vector<32x32xbf16>
    %cst_29 = arith.constant dense<0.000000e+00> : vector<16x32xf32>
    %58 = tpu.matmul %56, %57, %cst_29 {dimension_numbers = #tpu.dot_dimension_numbers<[1], [1], [0], [0], [0, 0, 1, 0], [], []>} : vector<16x32xbf16>, vector<32x32xbf16>, vector<16x32xf32> -> vector<16x32xf32>
    %59 = arith.addf %58, %11 : vector<16x32xf32>
    %cst_30 = arith.constant dense<0xFF800000> : vector<16xf32>
    %60 = vector.multi_reduction <maximumf>, %59, %cst_30 [1] : vector<16x32xf32> to vector<16xf32>
    %61 = vector.shape_cast %60 : vector<16xf32> to vector<16x1xf32>
    %62 = vector.broadcast %61 : vector<16x1xf32> to vector<16x32xf32>
    %63 = arith.subf %59, %62 : vector<16x32xf32>
    %64 = math.exp %63 : vector<16x32xf32>
    %cst_31 = arith.constant dense<0.000000e+00> : vector<16xf32>
    %65 = vector.multi_reduction <add>, %64, %cst_31 [1] : vector<16x32xf32> to vector<16xf32>
    %66 = vector.shape_cast %65 : vector<16xf32> to vector<16x1xf32>
    %67 = tpu.reciprocal %66 {approx = true} : vector<16x1xf32> -> vector<16x1xf32>
    %68 = vector.broadcast %67 : vector<16x1xf32> to vector<16x32xf32>
    %69 = arith.mulf %64, %68 : vector<16x32xf32>
    %70 = arith.truncf %69 : vector<16x32xf32> to vector<16x32xbf16>
    %c0_32 = arith.constant 0 : index
    %c64_33 = arith.constant 64 : index
    %71 = vector.load %arg22[%c0_32, %c64_33] : memref<32x128xbf16, #tpu.memory_space<vmem>>, vector<32x32xbf16>
    %cst_34 = arith.constant dense<0.000000e+00> : vector<16x32xf32>
    %72 = tpu.matmul %70, %71, %cst_34 {dimension_numbers = #tpu.dot_dimension_numbers<[1], [0], [0], [1], [0, 0, 1, 1], [], []>} : vector<16x32xbf16>, vector<32x32xbf16>, vector<16x32xf32> -> vector<16x32xf32>
    %73 = arith.truncf %72 : vector<16x32xf32> to vector<16x32xbf16>
    %c0_35 = arith.constant 0 : index
    %c64_36 = arith.constant 64 : index
    %74 = vector.load %arg23[%c0_35, %c64_36] : memref<16x128xbf16, #tpu.memory_space<vmem>>, vector<16x32xbf16>
    tpu.vector_store %arg23[%c0_35, %c64_36], %73 {strides = array<i32>} : memref<16x128xbf16, #tpu.memory_space<vmem>>, vector<16x32xbf16>,
    %75 = vector.extract_strided_slice %17 {offsets = [0, 96], sizes = [16, 32], strides = [1, 1]} : vector<16x128xbf16> to vector<16x32xbf16>
    %c0_37 = arith.constant 0 : index
    %c96 = arith.constant 96 : index
    %76 = vector.load %arg21[%c0_37, %c96] : memref<32x128xbf16, #tpu.memory_space<vmem>>, vector<32x32xbf16>
    %cst_38 = arith.constant dense<0.000000e+00> : vector<16x32xf32>
    %77 = tpu.matmul %75, %76, %cst_38 {dimension_numbers = #tpu.dot_dimension_numbers<[1], [1], [0], [0], [0, 0, 1, 0], [], []>} : vector<16x32xbf16>, vector<32x32xbf16>, vector<16x32xf32> -> vector<16x32xf32>
    %78 = arith.addf %77, %11 : vector<16x32xf32>
    %cst_39 = arith.constant dense<0xFF800000> : vector<16xf32>
    %79 = vector.multi_reduction <maximumf>, %78, %cst_39 [1] : vector<16x32xf32> to vector<16xf32>
    %80 = vector.shape_cast %79 : vector<16xf32> to vector<16x1xf32>
    %81 = vector.broadcast %80 : vector<16x1xf32> to vector<16x32xf32>
    %82 = arith.subf %78, %81 : vector<16x32xf32>
    %83 = math.exp %82 : vector<16x32xf32>
    %cst_40 = arith.constant dense<0.000000e+00> : vector<16xf32>
    %84 = vector.multi_reduction <add>, %83, %cst_40 [1] : vector<16x32xf32> to vector<16xf32>
    %85 = vector.shape_cast %84 : vector<16xf32> to vector<16x1xf32>
    %86 = tpu.reciprocal %85 {approx = true} : vector<16x1xf32> -> vector<16x1xf32>
    %87 = vector.broadcast %86 : vector<16x1xf32> to vector<16x32xf32>
    %88 = arith.mulf %83, %87 : vector<16x32xf32>
    %89 = arith.truncf %88 : vector<16x32xf32> to vector<16x32xbf16>
    %c0_41 = arith.constant 0 : index
    %c96_42 = arith.constant 96 : index
    %90 = vector.load %arg22[%c0_41, %c96_42] : memref<32x128xbf16, #tpu.memory_space<vmem>>, vector<32x32xbf16>
    %cst_43 = arith.constant dense<0.000000e+00> : vector<16x32xf32>
    %91 = tpu.matmul %89, %90, %cst_43 {dimension_numbers = #tpu.dot_dimension_numbers<[1], [0], [0], [1], [0, 0, 1, 1], [], []>} : vector<16x32xbf16>, vector<32x32xbf16>, vector<16x32xf32> -> vector<16x32xf32>
    %92 = arith.truncf %91 : vector<16x32xf32> to vector<16x32xbf16>
    %c0_44 = arith.constant 0 : index
    %c96_45 = arith.constant 96 : index
    %93 = vector.load %arg23[%c0_44, %c96_45] : memref<16x128xbf16, #tpu.memory_space<vmem>>, vector<16x32xbf16>
    tpu.vector_store %arg23[%c0_44, %c96_45], %92 {strides = array<i32>} : memref<16x128xbf16, #tpu.memory_space<vmem>>, vector<16x32xbf16>,
    %c0_46 = arith.constant 0 : index
    %c0_47 = arith.constant 0 : index
    %94 = vector.load %arg23[%c0_46, %c0_47] : memref<16x128xbf16, #tpu.memory_space<vmem>>, vector<16x128xbf16>
    %c0_48 = arith.constant 0 : index
    %c0_49 = arith.constant 0 : index
    %95 = vector.load %arg10[%c0_48, %c0_49] : memref<128x128xbf16, #tpu.memory_space<vmem>>, vector<128x128xbf16>
    %cst_50 = arith.constant dense<0.000000e+00> : vector<16x128xf32>
    %96 = tpu.matmul %94, %95, %cst_50 {dimension_numbers = #tpu.dot_dimension_numbers<[1], [0], [0], [1], [0, 0, 1, 1], [], []>} : vector<16x128xbf16>, vector<128x128xbf16>, vector<16x128xf32> -> vector<16x128xf32>
    %c0_51 = arith.constant 0 : index
    %c0_52 = arith.constant 0 : index
    %97 = vector.load %arg11[%c0_51, %c0_52] : memref<1x128xf32, #tpu.memory_space<vmem>>, vector<1x128xf32>
    %98 = vector.broadcast %97 : vector<1x128xf32> to vector<16x128xf32>
    %99 = arith.addf %96, %98 : vector<16x128xf32>
    %100 = arith.extf %7 : vector<16x128xbf16> to vector<16x128xf32>
    %101 = arith.addf %99, %100 : vector<16x128xf32>
    %c0_53 = arith.constant 0 : index
    %c0_54 = arith.constant 0 : index
    %102 = vector.load %arg12[%c0_53, %c0_54] : memref<1x128xf32, #tpu.memory_space<vmem>>, vector<1x128xf32>
    %c0_55 = arith.constant 0 : index
    %c0_56 = arith.constant 0 : index
    %103 = vector.load %arg13[%c0_55, %c0_56] : memref<1x128xf32, #tpu.memory_space<vmem>>, vector<1x128xf32>
    %cst_57 = arith.constant dense<0.000000e+00> : vector<16xf32>
    %104 = vector.multi_reduction <add>, %101, %cst_57 [1] : vector<16x128xf32> to vector<16xf32>
    %105 = vector.shape_cast %104 : vector<16xf32> to vector<16x1xf32>
    %cst_58 = arith.constant 1.280000e+02 : f32
    %106 = vector.broadcast %cst_58 : f32 to vector<16x1xf32>
    %107 = arith.divf %105, %106 : vector<16x1xf32>
    %108 = vector.broadcast %107 : vector<16x1xf32> to vector<16x128xf32>
    %109 = arith.subf %101, %108 : vector<16x128xf32>
    %110 = arith.mulf %109, %109 : vector<16x128xf32>
    %cst_59 = arith.constant dense<0.000000e+00> : vector<16xf32>
    %111 = vector.multi_reduction <add>, %110, %cst_59 [1] : vector<16x128xf32> to vector<16xf32>
    %112 = vector.shape_cast %111 : vector<16xf32> to vector<16x1xf32>
    %cst_60 = arith.constant 1.280000e+02 : f32
    %113 = vector.broadcast %cst_60 : f32 to vector<16x1xf32>
    %114 = arith.divf %112, %113 : vector<16x1xf32>
    %115 = vector.broadcast %107 : vector<16x1xf32> to vector<16x128xf32>
    %116 = arith.subf %101, %115 : vector<16x128xf32>
    %cst_61 = arith.constant 9.99999974E-6 : f32
    %117 = vector.broadcast %cst_61 : f32 to vector<16x1xf32>
    %118 = arith.addf %114, %117 : vector<16x1xf32>
    %119 = math.rsqrt %118 : vector<16x1xf32>
    %120 = vector.broadcast %119 : vector<16x1xf32> to vector<16x128xf32>
    %121 = arith.mulf %116, %120 : vector<16x128xf32>
    %122 = vector.broadcast %102 : vector<1x128xf32> to vector<16x128xf32>
    %123 = arith.mulf %121, %122 : vector<16x128xf32>
    %124 = vector.broadcast %103 : vector<1x128xf32> to vector<16x128xf32>
    %125 = arith.addf %123, %124 : vector<16x128xf32>
    %126 = arith.truncf %125 : vector<16x128xf32> to vector<16x128xbf16>
    %c0_62 = arith.constant 0 : index
    %c0_63 = arith.constant 0 : index
    %127 = vector.load %arg14[%c0_62, %c0_63] : memref<128x256xbf16, #tpu.memory_space<vmem>>, vector<128x256xbf16>
    %cst_64 = arith.constant dense<0.000000e+00> : vector<16x256xf32>
    %128 = tpu.matmul %126, %127, %cst_64 {dimension_numbers = #tpu.dot_dimension_numbers<[1], [0], [0], [1], [0, 0, 1, 1], [], []>} : vector<16x128xbf16>, vector<128x256xbf16>, vector<16x256xf32> -> vector<16x256xf32>
    %c0_65 = arith.constant 0 : index
    %c0_66 = arith.constant 0 : index
    %129 = vector.load %arg15[%c0_65, %c0_66] : memref<1x256xf32, #tpu.memory_space<vmem>>, vector<1x256xf32>
    %130 = vector.broadcast %129 : vector<1x256xf32> to vector<16x256xf32>
    %131 = arith.addf %128, %130 : vector<16x256xf32>
    %cst_67 = arith.constant 0.000000e+00 : f32
    %132 = vector.broadcast %cst_67 : f32 to vector<16x256xf32>
    %133 = arith.maximumf %131, %132 : vector<16x256xf32>
    %134 = arith.truncf %133 : vector<16x256xf32> to vector<16x256xbf16>
    %c0_68 = arith.constant 0 : index
    %c0_69 = arith.constant 0 : index
    %135 = vector.load %arg16[%c0_68, %c0_69] : memref<256x128xbf16, #tpu.memory_space<vmem>>, vector<256x128xbf16>
    %cst_70 = arith.constant dense<0.000000e+00> : vector<16x128xf32>
    %136 = tpu.matmul %134, %135, %cst_70 {dimension_numbers = #tpu.dot_dimension_numbers<[1], [0], [0], [1], [0, 0, 1, 1], [], []>} : vector<16x256xbf16>, vector<256x128xbf16>, vector<16x128xf32> -> vector<16x128xf32>
    %c0_71 = arith.constant 0 : index
    %c0_72 = arith.constant 0 : index
    %137 = vector.load %arg17[%c0_71, %c0_72] : memref<1x128xf32, #tpu.memory_space<vmem>>, vector<1x128xf32>
    %138 = vector.broadcast %137 : vector<1x128xf32> to vector<16x128xf32>
    %139 = arith.addf %136, %138 : vector<16x128xf32>
    %140 = arith.addf %139, %125 : vector<16x128xf32>
    %c0_73 = arith.constant 0 : index
    %c0_74 = arith.constant 0 : index
    %141 = vector.load %arg18[%c0_73, %c0_74] : memref<1x128xf32, #tpu.memory_space<vmem>>, vector<1x128xf32>
    %c0_75 = arith.constant 0 : index
    %c0_76 = arith.constant 0 : index
    %142 = vector.load %arg19[%c0_75, %c0_76] : memref<1x128xf32, #tpu.memory_space<vmem>>, vector<1x128xf32>
    %cst_77 = arith.constant dense<0.000000e+00> : vector<16xf32>
    %143 = vector.multi_reduction <add>, %140, %cst_77 [1] : vector<16x128xf32> to vector<16xf32>
    %144 = vector.shape_cast %143 : vector<16xf32> to vector<16x1xf32>
    %cst_78 = arith.constant 1.280000e+02 : f32
    %145 = vector.broadcast %cst_78 : f32 to vector<16x1xf32>
    %146 = arith.divf %144, %145 : vector<16x1xf32>
    %147 = vector.broadcast %146 : vector<16x1xf32> to vector<16x128xf32>
    %148 = arith.subf %140, %147 : vector<16x128xf32>
    %149 = arith.mulf %148, %148 : vector<16x128xf32>
    %cst_79 = arith.constant dense<0.000000e+00> : vector<16xf32>
    %150 = vector.multi_reduction <add>, %149, %cst_79 [1] : vector<16x128xf32> to vector<16xf32>
    %151 = vector.shape_cast %150 : vector<16xf32> to vector<16x1xf32>
    %cst_80 = arith.constant 1.280000e+02 : f32
    %152 = vector.broadcast %cst_80 : f32 to vector<16x1xf32>
    %153 = arith.divf %151, %152 : vector<16x1xf32>
    %154 = vector.broadcast %146 : vector<16x1xf32> to vector<16x128xf32>
    %155 = arith.subf %140, %154 : vector<16x128xf32>
    %cst_81 = arith.constant 9.99999974E-6 : f32
    %156 = vector.broadcast %cst_81 : f32 to vector<16x1xf32>
    %157 = arith.addf %153, %156 : vector<16x1xf32>
    %158 = math.rsqrt %157 : vector<16x1xf32>
    %159 = vector.broadcast %158 : vector<16x1xf32> to vector<16x128xf32>
    %160 = arith.mulf %155, %159 : vector<16x128xf32>
    %161 = vector.broadcast %141 : vector<1x128xf32> to vector<16x128xf32>
    %162 = arith.mulf %160, %161 : vector<16x128xf32>
    %163 = vector.broadcast %142 : vector<1x128xf32> to vector<16x128xf32>
    %164 = arith.addf %162, %163 : vector<16x128xf32>
    %165 = arith.truncf %164 : vector<16x128xf32> to vector<16x128xbf16>
    %c0_82 = arith.constant 0 : index
    %c0_83 = arith.constant 0 : index
    %c0_84 = arith.constant 0 : index
    %166 = vector.load %arg20[%c0_82, %c0_83, %c0_84] : memref<1x16x128xbf16, #tpu.memory_space<vmem>>, vector<1x16x128xbf16>
    %167 = vector.shape_cast %166 : vector<1x16x128xbf16> to vector<16x128xbf16>
    %168 = vector.shape_cast %165 : vector<16x128xbf16> to vector<1x16x128xbf16>
    tpu.vector_store %arg20[%c0_82, %c0_83, %c0_84], %168 {strides = array<i32>} : memref<1x16x128xbf16, #tpu.memory_space<vmem>>, vector<1x16x128xbf16>,
    return
  }
  func.func @transform_0(%arg0: i32, %arg1: i32) -> (i32, i32, i32) {
    %c0_i32 = arith.constant 0 : i32
    %c0_i32_0 = arith.constant 0 : i32
    %c0_i32_1 = arith.constant 0 : i32
    return %arg0, %c0_i32, %c0_i32_0 : i32, i32, i32
  }
  func.func @transform_1(%arg0: i32, %arg1: i32) -> (i32, i32, i32) {
    %c0_i32 = arith.constant 0 : i32
    %c0_i32_0 = arith.constant 0 : i32
    %c0_i32_1 = arith.constant 0 : i32
    return %arg0, %c0_i32, %c0_i32_0 : i32, i32, i32
  }
  func.func @transform_2(%arg0: i32, %arg1: i32) -> (i32, i32) {
    %c0_i32 = arith.constant 0 : i32
    %c0_i32_0 = arith.constant 0 : i32
    %c0_i32_1 = arith.constant 0 : i32
    return %c0_i32, %c0_i32_0 : i32, i32
  }
  func.func @transform_3(%arg0: i32, %arg1: i32) -> (i32, i32) {
    %c0_i32 = arith.constant 0 : i32
    %c0_i32_0 = arith.constant 0 : i32
    %c0_i32_1 = arith.constant 0 : i32
    return %c0_i32, %c0_i32_0 : i32, i32
  }
  func.func @transform_4(%arg0: i32, %arg1: i32) -> (i32, i32) {
    %c0_i32 = arith.constant 0 : i32
    %c0_i32_0 = arith.constant 0 : i32
    %c0_i32_1 = arith.constant 0 : i32
    return %c0_i32, %c0_i32_0 : i32, i32
  }
  func.func @transform_5(%arg0: i32, %arg1: i32) -> (i32, i32) {
    %c0_i32 = arith.constant 0 : i32
    %c0_i32_0 = arith.constant 0 : i32
    %c0_i32_1 = arith.constant 0 : i32
    return %c0_i32, %c0_i32_0 : i32, i32
  }
  func.func @transform_6(%arg0: i32, %arg1: i32) -> (i32, i32) {
    %c0_i32 = arith.constant 0 : i32
    %c0_i32_0 = arith.constant 0 : i32
    %c0_i32_1 = arith.constant 0 : i32
    return %c0_i32, %c0_i32_0 : i32, i32
  }
  func.func @transform_7(%arg0: i32, %arg1: i32) -> (i32, i32) {
    %c0_i32 = arith.constant 0 : i32
    %c0_i32_0 = arith.constant 0 : i32
    %c0_i32_1 = arith.constant 0 : i32
    return %c0_i32, %c0_i32_0 : i32, i32
  }
  func.func @transform_8(%arg0: i32, %arg1: i32) -> (i32, i32) {
    %c0_i32 = arith.constant 0 : i32
    %c0_i32_0 = arith.constant 0 : i32
    %c0_i32_1 = arith.constant 0 : i32
    return %c0_i32, %c0_i32_0 : i32, i32
  }
  func.func @transform_9(%arg0: i32, %arg1: i32) -> (i32, i32) {
    %c0_i32 = arith.constant 0 : i32
    %c0_i32_0 = arith.constant 0 : i32
    %c0_i32_1 = arith.constant 0 : i32
    return %c0_i32, %c0_i32_0 : i32, i32
  }
  func.func @transform_10(%arg0: i32, %arg1: i32) -> (i32, i32) {
    %c0_i32 = arith.constant 0 : i32
    %c0_i32_0 = arith.constant 0 : i32
    %c0_i32_1 = arith.constant 0 : i32
    return %c0_i32, %c0_i32_0 : i32, i32
  }
  func.func @transform_11(%arg0: i32, %arg1: i32) -> (i32, i32) {
    %c0_i32 = arith.constant 0 : i32
    %c0_i32_0 = arith.constant 0 : i32
    %c0_i32_1 = arith.constant 0 : i32
    return %c0_i32, %c0_i32_0 : i32, i32
  }
  func.func @transform_12(%arg0: i32, %arg1: i32) -> (i32, i32) {
    %c0_i32 = arith.constant 0 : i32
    %c0_i32_0 = arith.constant 0 : i32
    %c0_i32_1 = arith.constant 0 : i32
    return %c0_i32, %c0_i32_0 : i32, i32
  }
  func.func @transform_13(%arg0: i32, %arg1: i32) -> (i32, i32) {
    %c0_i32 = arith.constant 0 : i32
    %c0_i32_0 = arith.constant 0 : i32
    %c0_i32_1 = arith.constant 0 : i32
    return %c0_i32, %c0_i32_0 : i32, i32
  }
  func.func @transform_14(%arg0: i32, %arg1: i32) -> (i32, i32) {
    %c0_i32 = arith.constant 0 : i32
    %c0_i32_0 = arith.constant 0 : i32
    %c0_i32_1 = arith.constant 0 : i32
    return %c0_i32, %c0_i32_0 : i32, i32
  }
  func.func @transform_15(%arg0: i32, %arg1: i32) -> (i32, i32) {
    %c0_i32 = arith.constant 0 : i32
    %c0_i32_0 = arith.constant 0 : i32
    %c0_i32_1 = arith.constant 0 : i32
    return %c0_i32, %c0_i32_0 : i32, i32
  }
  func.func @transform_16(%arg0: i32, %arg1: i32) -> (i32, i32) {
    %c0_i32 = arith.constant 0 : i32
    %c0_i32_0 = arith.constant 0 : i32
    %c0_i32_1 = arith.constant 0 : i32
    return %c0_i32, %c0_i32_0 : i32, i32
  }
  func.func @transform_17(%arg0: i32, %arg1: i32) -> (i32, i32) {
    %c0_i32 = arith.constant 0 : i32
    %c0_i32_0 = arith.constant 0 : i32
    %c0_i32_1 = arith.constant 0 : i32
    return %c0_i32, %c0_i32_0 : i32, i32
  }
  func.func @transform_18(%arg0: i32, %arg1: i32) -> (i32, i32, i32) {
    %c0_i32 = arith.constant 0 : i32
    %c0_i32_0 = arith.constant 0 : i32
    return %arg0, %arg1, %c0_i32 : i32, i32, i32
  }
}

</mosaic_0001>

<bundles_post_ra>
// kernel: tpu_custom_call.1
= control target key start
LH: loop header
LB: loop body
LE: loop exit
PB: predicated region body
PF: predicated region fallthrough
CT: control target
= control target key end

     0   :  { %s4320_s0 = inlined_call_operand.hbm [shape: bf16[2,32,128], index: 0, kind: input, shape index: {}]   ;;  %s4321_s1 = inlined_call_operand.hbm [shape: f32[2,1,32], index: 1, kind: input, shape index: {}]   ;;  %s4322_s2 = inlined_call_operand.hbm [shape: bf16[128,128], index: 2, kind: input, shape index: {}]   ;;  %s4323_s3 = inlined_call_operand.vmem [shape: f32[1,128], index: 3, kind: input, shape index: {}]   ;;  %s4324_s4 = inlined_call_operand.hbm [shape: bf16[128,128], index: 4, kind: input, shape index: {}]   ;;  %s4325_s5 = inlined_call_operand.vmem [shape: f32[1,128], index: 5, kind: input, shape index: {}]   ;;  %s4326_s6 = inlined_call_operand.hbm [shape: bf16[128,128], index: 6, kind: input, shape index: {}]   ;;  %s4327_s7 = inlined_call_operand.vmem [shape: f32[1,128], index: 7, kind: input, shape index: {}]   ;;  %s4328_s8 = inlined_call_operand.hbm [shape: bf16[128,128], index: 8, kind: input, shape index: {}]   ;;  %s4329_s9 = inlined_call_operand.vmem [shape: f32[1,128], index: 9, kind: input, shape index: {}]   ;;  %s4330_s10 = inlined_call_operand.vmem [shape: f32[1,128], index: 10, kind: input, shape index: {}]   ;;  %s4331_s11 = inlined_call_operand.vmem [shape: f32[1,128], index: 11, kind: input, shape index: {}]   ;;  %s4332_s12 = inlined_call_operand.hbm [shape: bf16[128,256], index: 12, kind: input, shape index: {}]   ;;  %s4333_s13 = inlined_call_operand.vmem [shape: f32[1,256], index: 13, kind: input, shape index: {}]   ;;  %s4334_s14 = inlined_call_operand.hbm [shape: bf16[256,128], index: 14, kind: input, shape index: {}]   ;;  %s4335_s15 = inlined_call_operand.vmem [shape: f32[1,128], index: 15, kind: input, shape index: {}]   ;;  %s4336_s16 = inlined_call_operand.vmem [shape: f32[1,128], index: 16, kind: input, shape index: {}]   ;;  %s4337_s17 = inlined_call_operand.vmem [shape: f32[1,128], index: 17, kind: input, shape index: {}]   ;;  %s4338_s18 = inlined_call_operand.hbm [shape: bf16[2,32,128], index: 18, kind: output, shape index: {}]  }
   0x1   :  { %4349 = sst [smem:[#allocation37_spill]] %s4320_s0 }
   0x2   :  { %4350 = sst [smem:[#allocation38_spill]] %s4321_s1 }
   0x3   :  { %4351 = sst [smem:[#allocation39_spill]] %s4322_s2 }
   0x4   :  { %4352 = sst [smem:[#allocation40_spill]] %s4323_s3 }
   0x5   :  { %4353 = sst [smem:[#allocation41_spill]] %s4324_s4 }
   0x6   :  { %4354 = sst [smem:[#allocation42_spill]] %s4326_s6 }
   0x7   :  { %4355 = sst [smem:[#allocation43_spill]] %s4328_s8 }
   0x8   :  { %4356 = sst [smem:[#allocation44_spill]] %s4329_s9 }
   0x9   :  { %4357 = sst [smem:[#allocation45_spill]] %s4330_s10 }
   0xa   :  { %4358 = sst [smem:[#allocation46_spill]] %s4331_s11 }
   0xb   :  { %4359 = sst [smem:[#allocation47_spill]] %s4332_s12 }
   0xc   :  { %4360 = sst [smem:[#allocation48_spill]] %s4333_s13 }
   0xd   :  { %4361 = sst [smem:[#allocation49_spill]] %s4334_s14 }
   0xe   :  { %4362 = sst [smem:[#allocation50_spill]] %s4335_s15 }
   0xf   :  { %4363 = sst [smem:[#allocation51_spill]] %s4336_s16 }
  0x10   :  { %4364 = sst [smem:[#allocation52_spill]] %s4337_s17 }
  0x11   :  { %4365 = sst [smem:[#allocation53_spill]] %s4338_s18 }
  0x12   :  { %23 = vsyncpa [#allocation6], 0 }
  0x13   :  { %25 = vsyncpa [#allocation6 + $0x1], 0 }
  0x14   :  { %26 = vsyncpa [#allocation9], 0 }
  0x15   :  { %28 = vsyncpa [#allocation9 + $0x1], 0 }
  0x16   :  { %29 = vsyncpa [#allocation12], 0 }
  0x17   :  { %30 = vsyncpa [#allocation15], 0 }
  0x18   :  { %31 = vsyncpa [#allocation18], 0 }
  0x19   :  { %32 = vsyncpa [#allocation7], 0 }
  0x1a   :  { %34 = vsyncpa [#allocation7 + $0x1], 0  ;;  %s3780_s27 = smov 0   ;;  %s3782_s28 = smov 0  }
  0x1b   :  { %s3784_s29 = smov 0   ;;  %s3786_s30 = smov 0  }
  0x1c   :  { %s3788_s0 = smov 0   ;;  %s3790_s19 = smov 0  }
  0x1d   :  { %s3792_s1 = smov 0   ;;  %s3794_s20 = smov 0  }
  0x1e   :  { %s3796_s21 = smov 0   ;;  %s3798_s22 = smov 0  }
  0x1f   :  { %s3800_s2 = smov 0  }
  0x20 LB: > { %4366 = sst [smem:[#allocation27_spill]] %s3623_s27  ;;  %s3836_s23 = sadd.s32 4294967295, %s3663_s2   ;;  %s3663_s2 = sphi %s3800_s2, %s40_s2   ;;  %s3659_s22 = sphi %s3798_s22, %s4419_s22   ;;  %s3655_s21 = sphi %s3796_s21, %s4412_s21   ;;  %s3651_s20 = sphi %s3794_s20, %s4418_s20   ;;  %s3647_s1 = sphi %s3792_s1, %s4411_s1   ;;  %s3643_s19 = sphi %s3790_s19, %s4410_s19   ;;  %s3639_s0 = sphi %s3788_s0, %s4417_s0   ;;  %s3635_s30 = sphi %s3786_s30, %s4416_s30   ;;  %s3631_s29 = sphi %s3784_s29, %s4408_s29   ;;  %s3627_s28 = sphi %s3782_s28, %s4415_s28   ;;  %s3623_s27 = sphi %s3780_s27, %s4414_s27  }
  0x21   : > { %4367 = sst [smem:[#allocation28_spill]] %s3631_s29  ;;  %p2575_p0 = scmp.ge.s32.totalorder %s3663_s2, 1 }
  0x22   : > { %4368 = sst [smem:[#allocation29_spill]] %s3643_s19  ;;  %p73_p1 = scmp.eq.s32.totalorder %s3836_s23, 0 }
  0x23   : > { %4369 = sst [smem:[#allocation30_spill]] %s3651_s20  ;;  %p473_p3 = scmp.lt.s32.totalorder %s3663_s2, 5 }
  0x24   : > { %4370 = sst [smem:[#allocation31_spill]] %s3655_s21  ;;  %s3665_s25 = smov [#allocation10]  }
  0x25   : > { %p3842_p4 = pnand %p2575_p0, %p473_p3  ;;  %s485_s26 = sshll.u32 %s3665_s25, 4  ;;  %s486_s26 = int_to_ptr.vmem [resolvable:$true] %s485_s26 }
  0x26   : > { %s3666_s17 = smov [#allocation11]   ;;  %s3667_s20 = smov [#allocation14]  }
  0x27   : > { %p3029_p5 = pneg %p3842_p4  ;;  %s501_s16 = sshll.u32 %s3666_s17, 4  ;;  %s3854_s16 = int_to_ptr.vmem [resolvable:$true] %s501_s16 }
  0x28   : > { %s533_s15 = sshll.u32 %s3667_s20, 4  ;;  %s3322_s13 = scalar_lea.vmem %s486_s26, 1024  ;;  %s3856_s15 = int_to_ptr.vmem [resolvable:$true] %s533_s15 }
  0x29   : > { %p3850_p6 = pnand %p3029_p5, %p73_p1  ;;  %p3323_p8 = scmp.ne.s32.totalorder %s486_s26, %s3322_s13 }
  0x2a   : > { %p3330_p11 = scmp.lt.s32.totalorder %s486_s26, %s486_s26  ;;  %p3331_p12 = scmp.lt.s32.totalorder %s3322_s13, %s3322_s13 }
  0x2b   : > { %p3860_p7 = pneg %p3850_p6 }
  0x2c   : > { %p3332_p13 = por %p3331_p12, %p3330_p11 }
  0x2d   : > { %p3325_p9 = pnand %p3323_p8, %p3860_p7 }
  0x2f   : > { %p3326_p10 = pneg %p3325_p9 }
  0x31   : > { %p3333_p0 = pnand %p3332_p13, %p3326_p10 }
  0x33   : > { %3336 = shalt.err (!%p3333_p0)
}
  0x34   : > { %s4340_s17 = smov 64   ;;  %s4341_s20 = smov 4  }
  0x35   : > { %s4374_s9 = sld [smem:[#allocation39_spill]]  ;;  %s3348_s3 = scalar_lea.vmem %s3854_s16, 1024 }
  0x36   : > { %p3349_p3 = scmp.ne.s32.totalorder %s3854_s16, %s3348_s3  ;;  %p3356_p9 = scmp.lt.s32.totalorder %s3854_s16, %s3854_s16 }
  0x37   : > { %p3357_p10 = scmp.lt.s32.totalorder %s3348_s3, %s3348_s3 }
  0x38   : > { %p3351_p5 = pnand %p3349_p3, %p3860_p7 }
  0x39   : > { %p3358_p11 = por %p3357_p10, %p3356_p9 }
  0x3a   : > { %p3352_p8 = pneg %p3351_p5 }
  0x3b   : > { %3032 = dma.hbm_to_vmem [thread:$0]  (!%p3850_p6), %s4374_s9, 1024, %s486_s26, [#allocation9], %s4340_s17, %s4340_s17, %s4341_s20  }
  0x3c   : > { %p3359_p12 = pnand %p3358_p11, %p3352_p8 }
  0x3e   : > { %3362 = shalt.err (!%p3359_p12)
}
  0x3f   : > { %s4375_s4 = sld [smem:[#allocation41_spill]]  ;;  %s3374_s9 = scalar_lea.vmem %s3856_s15, 1024 }
  0x40   : > { %p3375_p13 = scmp.ne.s32.totalorder %s3856_s15, %s3374_s9  ;;  %p3382_p5 = scmp.lt.s32.totalorder %s3856_s15, %s3856_s15 }
  0x41   : > { %p3383_p8 = scmp.lt.s32.totalorder %s3374_s9, %s3374_s9 }
  0x42   : > { %p3377_p0 = pnand %p3375_p13, %p3860_p7 }
  0x43   : > { %p3384_p9 = por %p3383_p8, %p3382_p5 }
  0x44   : > { %p3378_p3 = pneg %p3377_p0 }
  0x45   : > { %3035 = dma.hbm_to_vmem [thread:$0]  (!%p3850_p6), %s4375_s4, 1024, %s3854_s16, [#allocation12], %s4340_s17, %s4340_s17, %s4341_s20  }
  0x46   : > { %p3385_p10 = pnand %p3384_p9, %p3378_p3 }
  0x48   : > { %3388 = shalt.err (!%p3385_p10)
}
  0x49   : > { %s4376_s8 = sld [smem:[#allocation43_spill]]  ;;  %s3670_s16 = smov [#allocation13]  }
  0x4a   : > { %s517_s26 = sshll.u32 %s3670_s16, 4  ;;  %s3671_s13 = smov [#allocation16]   ;;  %s518_s26 = int_to_ptr.vmem [resolvable:$true] %s517_s26 }
  0x4b   : > { %s555_s10 = sshll.u32 %s3671_s13, 4  ;;  %s3400_s9 = scalar_lea.vmem %s518_s26, 1024  ;;  %s556_s10 = int_to_ptr.vmem [resolvable:$true] %s555_s10 }
  0x4c   : > { %p3401_p11 = scmp.ne.s32.totalorder %s518_s26, %s3400_s9  ;;  %p3408_p0 = scmp.lt.s32.totalorder %s518_s26, %s518_s26 }
  0x4d   : > { %p3409_p3 = scmp.lt.s32.totalorder %s3400_s9, %s3400_s9 }
  0x4e   : > { %p3403_p12 = pnand %p3401_p11, %p3860_p7 }
  0x4f   : > { %3041 = dma.hbm_to_vmem [thread:$0]  (!%p3850_p6), %s4376_s8, 1024, %s3856_s15, [#allocation15], %s4340_s17, %s4340_s17, %s4341_s20  }
  0x50   : > { %p3404_p13 = pneg %p3403_p12  ;;  %p3410_p5 = por %p3409_p3, %p3408_p0 }
  0x52   : > { %p3411_p8 = pnand %p3410_p5, %p3404_p13 }
  0x54   : > { %3414 = shalt.err (!%p3411_p8)
}
  0x55   : > { %s4377_s6 = sld [smem:[#allocation42_spill]]  ;;  %s3426_s11 = scalar_lea.vmem %s556_s10, 2048 }
  0x56   : > { %p3427_p9 = scmp.ne.s32.totalorder %s556_s10, %s3426_s11  ;;  %p3434_p12 = scmp.lt.s32.totalorder %s556_s10, %s556_s10 }
  0x57   : > { %p3435_p2 = scmp.lt.s32.totalorder %s3426_s11, %s3426_s11 }
  0x58   : > { %p3429_p10 = pnand %p3427_p9, %p3860_p7 }
  0x59   : > { %p3436_p0 = por %p3435_p2, %p3434_p12 }
  0x5a   : > { %p3430_p11 = pneg %p3429_p10 }
  0x5b   : > { %3038 = dma.hbm_to_vmem [thread:$0]  (!%p3850_p6), %s4377_s6, 1024, %s518_s26, [#allocation12], %s4340_s17, %s4340_s17, %s4341_s20  }
  0x5c   : > { %p3437_p13 = pnand %p3436_p0, %p3430_p11 }
  0x5e   : > { %3440 = shalt.err (!%p3437_p13)
}
  0x5f   : > { %s3672_s16 = smov 128   ;;  %s3673_s13 = smov 8  }
  0x60   : > { %s4378_s12 = sld [smem:[#allocation47_spill]]  ;;  %s3674_s26 = smov [#allocation17]  }
  0x61   : > { %s571_s15 = sshll.u32 %s3674_s26, 4  ;;  %s572_s15 = int_to_ptr.vmem [resolvable:$true] %s571_s15 }
  0x62   : > { %s3452_s3 = scalar_lea.vmem %s572_s15, 2048  ;;  %p3460_p2 = scmp.lt.s32.totalorder %s572_s15, %s572_s15 }
  0x63   : > { %p3453_p3 = scmp.ne.s32.totalorder %s572_s15, %s3452_s3  ;;  %p3461_p9 = scmp.lt.s32.totalorder %s3452_s3, %s3452_s3 }
  0x65   : > { %p3455_p5 = pnand %p3453_p3, %p3860_p7  ;;  %p3462_p10 = por %p3461_p9, %p3460_p2 }
  0x66   : > { %3044 = dma.hbm_to_vmem [thread:$0]  (!%p3850_p6), %s4378_s12, 2048, %s556_s10, [#allocation15], %s3672_s16, %s3672_s16, %s3673_s13  }
  0x67   : > { %p3456_p8 = pneg %p3455_p5 }
  0x69   : > { %p3463_p11 = pnand %p3462_p10, %p3456_p8 }
  0x6b   : > { %3466 = shalt.err (!%p3463_p11)
}
  0x6c   : > { %s4379_s14 = sld [smem:[#allocation49_spill]]  ;;  %s2574_s18 = sadd.s32 4294967294, %s3663_s2  }
  0x6d   : > { %s49_s25 = sadd.s32 1, %s3655_s21  ;;  %s52_s11 = sadd.s32 1, %s3659_s22 }
  0x6e   : > { %p50_p7 = scmp.ge.s32.totalorder %s49_s25, 2  ;;  %s59_s16 = sadd.s32 1, %s3643_s19 }
  0x6f   : > { %p66_p12 = scmp.ne.s32.totalorder %s3643_s19, %s3639_s0  ;;  %p67_p0 = scmp.eq.s32.totalorder %s3663_s2, 0 }
  0x70   : > { %s4421_s25 = smov (%p50_p7, %s49_s25), 0  ;;  %s4423_s11 = smov (!%p50_p7, %s52_s11), %s3659_s22 }
  0x71   : > { %4380 = sst [smem:[#allocation32_spill]] %s4421_s25  ;;  %p3941_p13 = por %p67_p0, %p66_p12 }
  0x72   : > { %3047 = dma.hbm_to_vmem [thread:$0]  (!%p3850_p6), %s4379_s14, 2048, %s572_s15, [#allocation18], %s4340_s17, %s4340_s17, %s4341_s20  }
  0x73   : > { %p72_p6 = scmp.ne.s32.totalorder %s3639_s0, %s3635_s30  ;;  %p54_p3 = scmp.ge.s32.totalorder %s4423_s11, 2 }
  0x74   : > { %s445_s9 = ssub.s32 %s3655_s21, %s4421_s25  ;;  %s449_s15 = sadd.s32 1, %s3631_s29 }
  0x75   : > { %p3951_p5 = por %p73_p1, %p72_p6  ;;  %s4425_s11 = smov (%p54_p3, %s4423_s11), 0 }
  0x76   : > { %4383 = sst [smem:[#allocation33_spill]] %s4425_s11  ;;  %p459_p8 = scmp.ne.s32.totalorder %s3631_s29, %s3627_s28 }
  0x77   : > { %p465_p2 = scmp.ne.s32.totalorder %s3627_s28, %s3623_s27  ;;  %s56_s3 = ssub.s32 %s3659_s22, %s4425_s11 }
  0x78   : > { %p466_p9 = scmp.eq.s32.totalorder %s2574_s18, 3  ;;  %p57_p10 = scmp.eq.s32.totalorder %s56_s3, 0 }
  0x79   : > { %s446_s30 = sor.u32 %s445_s9, %s56_s3  ;;  %p4384_p7 = scmp.eq.s32.totalorder %s3836_s23, 3 }
  0x7a   : > { %p447_p11 = scmp.eq.s32.totalorder %s446_s30, 0  ;;  %p3976_p0 = por %p466_p9, %p465_p2 }
  0x7b   : > { %p3966_p12 = por %p4384_p7, %p459_p8  ;;  %p3065_p6 = scmp.lt.s32.totalorder %s3663_s2, 4 }
  0x7c   : > { %s3971_s10 = scalar_select %p57_p10, %s3643_s19, %s59_s16  }
  0x7d   : > { %s3974_s17 = scalar_select %p447_p11, %s3631_s29, %s449_s15  }
  0x7e   : > { %4386 = sst [smem:[#allocation34_spill]] %s3971_s10  ;;  %s3982_s6 = sand.u32 1, %s3643_s19  }
  0x7f   : > { %4387 = sst [smem:[#allocation35_spill]] %s3974_s17  ;;  %s2725_s18 = sshll.u32 %s3659_s22, 8 }
  0x80   : > { %s4388_s20 = scalar_select %p3976_p0, 1, 0 }
  0x81   : > { %s2583_s9 = sshll.u32 %s3982_s6, 4  ;;  %s4390_s8 = sld [smem:[#allocation37_spill]] }
  0x82   : > { %4389 = sst [smem:[#allocation36_spill]] %s4388_s20  ;;  %s598_s14 = scalar_lea.vmem [#allocation5], %s2583_s9 }
  0x83   : > { %s605_s16 = sshll.u32 %s598_s14, 4  ;;  %p3991_p3 = pnand %p3065_p6, %p3941_p13  ;;  %s606_s16 = int_to_ptr.vmem [resolvable:$true] %s605_s16 }
  0x84   : > { %s615_s11 = sand.u32 1, %s3663_s2   ;;  %s595_s25 = scalar_lea.sflag [#allocation6], %s3982_s6 }
  0x85   : > { %p3469_p8 = pneg %p3991_p3  ;;  %s3480_s21 = scalar_lea.vmem %s606_s16, 256 }
  0x86   : > { %p3481_p2 = scmp.ne.s32.totalorder %s606_s16, %s3480_s21 }
  0x87   : > { %s604_s12 = scalar_lea.hbm %s4390_s8, %s2725_s18  ;;  %s3675_s8 = smov [#allocation5]  }
  0x88   : > { %p3483_p9 = pnand %p3481_p2, %p3469_p8  ;;  %s3485_s14 = sshll.u32 %s3675_s8, 4  ;;  %s3486_s14 = int_to_ptr.vmem [resolvable:$false] %s3485_s14 }
  0x89   : > { %s3487_s13 = scalar_lea.vmem %s3486_s14, 512  ;;  %p3488_p13 = scmp.lt.s32.totalorder %s606_s16, %s3486_s14 }
  0x8a   : > { %p3484_p10 = pneg %p3483_p9  ;;  %p3489_p11 = scmp.lt.s32.totalorder %s3487_s13, %s3480_s21 }
  0x8c   : > { %p3490_p7 = por %p3489_p11, %p3488_p13 }
  0x8e   : > { %p3491_p6 = pnand %p3490_p7, %p3484_p10 }
  0x90   : > { %3494 = shalt.err (!%p3491_p6)
}
  0x91   : > { %s4392_s18 = smov 4   ;;  %s4393_s9 = smov 64  }
  0x92   : > { %3051 = dma.hbm_to_vmem [thread:$0]  (!%p3991_p3), %s604_s12, 256, %s606_s16, %s595_s25, %s4393_s9, %s4393_s9, %s4392_s18  }
  0x93   : > { %s2586_s3 = sshll.u32 %s3659_s22, 4  ;;  %s4394_s8 = sld [smem:[#allocation38_spill]] }
  0x94   : > { %s618_s17 = scalar_lea.vmem [#allocation8], %s3982_s6  ;;  %s616_s21 = scalar_lea.sflag [#allocation9], %s615_s11 }
  0x95   : > { %s625_s14 = sshll.u32 %s618_s17, 4  ;;  %s3676_s29 = smov [#allocation8]   ;;  %s626_s14 = int_to_ptr.vmem [resolvable:$true] %s625_s14 }
  0x96   : > { %s3508_s13 = scalar_lea.vmem %s626_s14, 16  ;;  %s3513_s20 = sshll.u32 %s3676_s29, 4  ;;  %s3514_s20 = int_to_ptr.vmem [resolvable:$false] %s3513_s20 }
  0x97   : > { %p3509_p2 = scmp.ne.s32.totalorder %s626_s14, %s3508_s13  ;;  %s3515_s27 = scalar_lea.vmem %s3514_s20, 32 }
  0x98   : > { %p3516_p13 = scmp.lt.s32.totalorder %s626_s14, %s3514_s20  ;;  %p3517_p11 = scmp.lt.s32.totalorder %s3515_s27, %s3508_s13 }
  0x99   : > { %s623_s19 = scalar_lea.hbm %s4394_s8, %s2586_s3  ;;  %p3511_p9 = pnand %p3509_p2, %p3469_p8 }
  0x9a   : > { %p3518_p7 = por %p3517_p11, %p3516_p13 }
  0x9b   : > { %p3512_p10 = pneg %p3511_p9 }
  0x9d   : > { %p3519_p6 = pnand %p3518_p7, %p3512_p10 }
  0x9f   : > { %3522 = shalt.err (!%p3519_p6)
}
  0xa0   : > { %3054 = dma.hbm_to_vmem [thread:$0]  (!%p3991_p3), %s623_s19, 16, %s626_s14, %s616_s21  }
  0xa1   : > { %634 = sbr.rel (%p3842_p4) target bundleno = 3808 (0xee0), region = 92  ;;  %s4020_s6 = sand.u32 (!%p3842_p4), 1, %s3639_s0  }
  0xa2   : > { %s2588_s12 = sshll.u32 (!%p3842_p4), %s4020_s6, 4  ;;  %s637_s29 = scalar_lea.sflag (!%p3842_p4), [#allocation6], %s4020_s6 }
  0xa3   : > { %s4024_s17 = scalar_lea.vmem (!%p3842_p4), [#allocation5], %s2588_s12 }
  0xa6   : > { %3594 = dma.done.wait (%p3951_p5), %s637_s29, 256  }
  0xa7   : > { %3596 = vsyncadd (%p3951_p5), %s637_s29, 4294967040  ;;  %s645_s27 = sand.u32 1, %s3836_s23   ;;  %s648_s24 = scalar_lea.vmem [#allocation8], %s4020_s6 }
  0xa8   : > { %s646_s19 = scalar_lea.sflag [#allocation9], %s645_s27 }
  0xa9   : > { %3598 = dma.done.wait (%p3951_p5), %s646_s19, 16  }
  0xaa   : > { %3600 = vsyncadd (%p3951_p5), %s646_s19, 4294967280 }
  0xab   : > { %3602 = dma.done.wait (%p73_p1), [#allocation9], 1024  }
  0xac   : > { %3604 = vsyncadd (%p73_p1), [#allocation9], 4294966272 }
  0xad   : > { %3606 = dma.done.wait (%p73_p1), [#allocation12], 2048  }
  0xae   : > { %3608 = vsyncadd (%p73_p1), [#allocation12], 4294965248 }
  0xaf   : > { %3610 = dma.done.wait (%p73_p1), [#allocation15], 3072  }
  0xb0   : > { %3612 = vsyncadd (%p73_p1), [#allocation15], 4294964224 }
  0xb1   : > { %3614 = dma.done.wait (%p73_p1), [#allocation18], 2048  }
  0xb2   : > { %3616 = vsyncadd (%p73_p1), [#allocation18], 4294965248  ;;  %s726_s20 = sand.u32 1, %s3627_s28   ;;  %p2596_p4 = scmp.ne.s32.totalorder %s3647_s1, 0 }
  0xb3   : > { %s4055_s25 = sshll.u32 %s726_s20, 3 }
  0xb4   : > { %s728_s11 = scalar_lea.vmem [#allocation19], %s4055_s25  ;;  %734 = sbr.rel (%p2596_p4) target bundleno = 423 (0x1a7), region = 128 }
  0xb9   : > { %v3178_v0 = vld [vmem:[#allocation11 + $0x38] sm:$0xff]   ;;  %v3180_v2 = vld [vmem:[#allocation11 + $0x30] sm:$0xff]   ;;  %v3182_v4 = vld [vmem:[#allocation11 + $0x28] sm:$0xff]  }
  0xba   : > { %v3179_v1 = vld [vmem:[#allocation13 + $0x38] sm:$0xff]   ;;  %2855 = vmatprep.subr.bf16.mxu0 %v3178_v0  ;;  %v3181_v3 = vld [vmem:[#allocation13 + $0x30] sm:$0xff]   ;;  %v3183_v5 = vld [vmem:[#allocation13 + $0x28] sm:$0xff]  }
  0xbb   : > { %2875 = vmatprep.subr.bf16.mxu1 %v3179_v1  ;;  %2856 = vmatpush3.bf16.msra.mxu0 %v3178_v0  ;;  %v3184_v6 = vld [vmem:[#allocation11 + $0x20] sm:$0xff]   ;;  %v3186_v8 = vld [vmem:[#allocation11 + $0x18] sm:$0xff]   ;;  %v3188_v10 = vld [vmem:[#allocation11 + $0x10] sm:$0xff]  }
  0xbc   : > { %2876 = vmatpush3.bf16.msra.mxu1 %v3179_v1  ;;  %2857 = vmatprep.subr.bf16.mxu0 %v3180_v2  ;;  %v3185_v7 = vld [vmem:[#allocation13 + $0x20] sm:$0xff]   ;;  %v3187_v9 = vld [vmem:[#allocation13 + $0x18] sm:$0xff]   ;;  %v3189_v12 = vld [vmem:[#allocation13 + $0x10] sm:$0xff]  }
  0xbd   : > { %2877 = vmatprep.subr.bf16.mxu1 %v3181_v3  ;;  %v3194_v11 = vld [vmem:[%s4024_s17] sm:$0xff]   ;;  %v3195_v17 = vld [vmem:[%s4024_s17 + $0x8] sm:$0xff]  }
  0xbe   : > { %2871 = vmatprep.mubr.bf16.mxu0 %v3194_v11  ;;  %2891 = vmatprep.mubr.bf16.mxu1 %v3194_v11  ;;  %v3190_v13 = vld [vmem:[#allocation11 + $0x8] sm:$0xff]   ;;  %v3192_v15 = vld [vmem:[#allocation11] sm:$0xff]   ;;  %v2597_v20 = vld [vmem:[%s4325_s5] ss:$0 sm:$0xff] }
  0xbf   : > { %2858 = vmatpush3.bf16.msra.mxu0 %v3180_v2  ;;  %v3191_v14 = vld [vmem:[#allocation13 + $0x8] sm:$0xff]   ;;  %v3193_v16 = vld [vmem:[#allocation13] sm:$0xff]   ;;  %v2612_v22 = vld [vmem:[%s4327_s7] ss:$0 sm:$0xff] }
  0xc0   : > { %2878 = vmatpush3.bf16.msra.mxu1 %v3181_v3  ;;  %2859 = vmatprep.subr.bf16.mxu0 %v3182_v4 }
  0xc1   : > { %2879 = vmatprep.subr.bf16.mxu1 %v3183_v5 }
  0xc3   : > { %2860 = vmatpush3.bf16.msra.mxu0 %v3182_v4 }
  0xc4   : > { %2880 = vmatpush3.bf16.msra.mxu1 %v3183_v5  ;;  %2861 = vmatprep.subr.bf16.mxu0 %v3184_v6 }
  0xc5   : > { %2881 = vmatprep.subr.bf16.mxu1 %v3185_v7 }
  0xc7   : > { %2862 = vmatpush3.bf16.msra.mxu0 %v3184_v6 }
  0xc8   : > { %2882 = vmatpush3.bf16.msra.mxu1 %v3185_v7  ;;  %2863 = vmatprep.subr.bf16.mxu0 %v3186_v8 }
  0xc9   : > { %2883 = vmatprep.subr.bf16.mxu1 %v3187_v9 }
  0xcb   : > { %2864 = vmatpush3.bf16.msra.mxu0 %v3186_v8 }
  0xcc   : > { %2884 = vmatpush3.bf16.msra.mxu1 %v3187_v9  ;;  %2865 = vmatprep.subr.bf16.mxu0 %v3188_v10 }
  0xcd   : > { %2885 = vmatprep.subr.bf16.mxu1 %v3189_v12 }
  0xcf   : > { %2866 = vmatpush3.bf16.msra.mxu0 %v3188_v10 }
  0xd0   : > { %2886 = vmatpush3.bf16.msra.mxu1 %v3189_v12  ;;  %2867 = vmatprep.subr.bf16.mxu0 %v3190_v13 }
  0xd1   : > { %2887 = vmatprep.subr.bf16.mxu1 %v3191_v14 }
  0xd3   : > { %2868 = vmatpush3.bf16.msra.mxu0 %v3190_v13 }
  0xd4   : > { %2888 = vmatpush3.bf16.msra.mxu1 %v3191_v14  ;;  %2869 = vmatprep.subr.bf16.mxu0 %v3192_v15 }
  0xd5   : > { %2889 = vmatprep.subr.bf16.mxu1 %v3193_v16 }
  0xd7   : > { %2870 = vmatpush3.bf16.msra.mxu0 %v3192_v15 }
  0xd8   : > { %2890 = vmatpush3.bf16.msra.mxu1 %v3193_v16 }
  0xda   : > { %2872 = vmatmul.mubr.bf16.vlgmr.msra.gmra.mxu0 %v3195_v17 }
  0xdb   : > { %2892 = vmatmul.mubr.bf16.vlgmr.msra.gmra.mxu1 %v3195_v17 }
 0x19a   : > { %v2873_v18 = vpop.f32.mrf.mxu0 }
 0x19b   : > { %v2893_v19 = vpop.f32.mrf.mxu1  ;;  %v865_v25 = vadd.f32 %v2873_v18, %v2597_v20 }
 0x19c   : > { %v856_v21 = vpop.f32.mrf.mxu0  ;;  %v1005_v28 = vadd.f32 %v2893_v19, %v2612_v22 }
 0x19d   : > { %v996_v23 = vpop.f32.mrf.mxu1  ;;  %v857_v31 = vadd.f32 %v2597_v20, %v856_v21 }
 0x19e   : > { %v2874_v24 = vpop.f32.mrf.mxu0  ;;  %v997_v35 = vadd.f32 %v2612_v22, %v996_v23 }
 0x19f   : > { %v868_v26 = vadd.f32 %v2874_v24, %v2597_v20  ;;  %v2894_v27 = vpop.f32.mrf.mxu1 }
 0x1a0   : > { %v1008_v29 = vadd.f32 %v2894_v27, %v2612_v22  ;;  %v859_v30 = vpop.f32.mrf.mxu0 }
 0x1a1   : > { %v2752_v32 = vpack.c.bf16 %v868_v26, %v865_v25  ;;  %v860_v33 = vadd.f32 %v2597_v20, %v859_v30  ;;  %v999_v34 = vpop.f32.mrf.mxu1 }
 0x1a2   : > { %v2762_v36 = vpack.c.bf16 %v1008_v29, %v1005_v28  ;;  %v1000_v37 = vadd.f32 %v2612_v22, %v999_v34 }
 0x1a3   : > { %2769 = vst [vmem:[#allocation2 + $0x8] sm:$0xff] %v2752_v32   ;;  %v2747_v38 = vpack.c.bf16 %v860_v33, %v857_v31 }
 0x1a4   : > { %2770 = vst [vmem:[#allocation3 + $0x8] sm:$0xff] %v2762_v36   ;;  %v2757_v39 = vpack.c.bf16 %v1000_v37, %v997_v35 }
 0x1a5   : > { %2748 = vst [vmem:[#allocation2] sm:$0xff] %v2747_v38  }
 0x1a6   : > { %2758 = vst [vmem:[#allocation3] sm:$0xff] %v2757_v39  }
 0x1a7 PF: > { %v3196_v40 = vld [vmem:[#allocation10 + $0x38] sm:$0xff]   ;;  %v3677_v41 = vmov 0.0   ;;  %v3197_v42 = vld [vmem:[#allocation10 + $0x30] sm:$0xff]   ;;  %vm3678_vm0 = vmmov 0   ;;  %s2625_s15 = sshll.u32 %s3647_s1, 4  ;;  %v3198_v43 = vld [vmem:[#allocation10 + $0x28] sm:$0xff]  }
 0x1a8   : > { %2895 = vmatprep.subr.bf16.mxu0 %v3677_v41  ;;  %2915 = vmatprep.subr.bf16.mxu1 %v3677_v41  ;;  %s1032_s18 = sshra.s32 %s2625_s15, 3  ;;  %vm1178_vm1 = vcmask 261120   ;;  %v3199_v44 = vld [vmem:[#allocation10 + $0x20] sm:$0xff]   ;;  %v3200_v47 = vld [vmem:[#allocation10 + $0x18] sm:$0xff]   ;;  %v3201_v48 = vld [vmem:[#allocation10 + $0x10] sm:$0xff]   ;;  %s4395_s14 = sld [smem:[#allocation40_spill]] }
 0x1a9   : > { %2896 = vmatpush3.bf16.msra.mxu0 %v3196_v40  ;;  %2911 = vmatprep.mubr.msk.bf16.mxu0 %vm3678_vm0, %v3677_v41  ;;  %s2626_s9 = sshll.u32 %s1032_s18, 2  ;;  %v3202_v49 = vld [vmem:[#allocation10 + $0x8] sm:$0xff]   ;;  %v3203_v50 = vld [vmem:[#allocation10] sm:$0xff]   ;;  %v4103_v62 = vld [vmem:[%s648_s24] ss:$0 sm:$0xff]  ;;  %s3679_s21 = smov 96  }
 0x1aa   : > { %2897 = vmatprep.subr.bf16.mxu0 %v3677_v41  ;;  %2919 = vmatprep.mubr.msk.bf16.mxu1 %vm3678_vm0, %v3677_v41  ;;  %v3205_v45 = vld [vmem:[#allocation2 + $0x8] sm:$0xff]   ;;  %s1035_s3 = scalar_lea.vmem %s4024_s17, %s2626_s9 [#allocation5]  ;;  %s3680_s13 = smov 64   ;;  %vm1320_vm2 = vcmask 257024   ;;  %vm1493_vm3 = vcmask 519424   ;;  %vm1665_vm4 = vcmask 781824   ;;  %vm1837_vm5 = vcmask 1044224  }
 0x1ab   : > { %v1186_v46 = vsel %vm1178_vm1, %v3205_v45, 0  ;;  %v4083_v51 = vld [vmem:[%s1035_s3] sm:$0xff]   ;;  %v3209_v7 = vld [vmem:[#allocation2 + $0x8] sm:$0xff]   ;;  %v3211_v21 = vld [vmem:[#allocation3 + $0x8] sm:$0xff]   ;;  %s3681_s6 = smov 32   ;;  %s4396_s17 = sld [smem:[#allocation44_spill]] }
 0x1ac   : > { %2916 = vmatpush3.bf16.xpose.msra.mxu1 %v1186_v46  ;;  %v3206_v52 = vld [vmem:[#allocation2] sm:$0xff]   ;;  %v3208_v20 = vld [vmem:[#allocation2 + $0x8] sm:$0xff]   ;;  %s4397_s24 = sld [smem:[#allocation45_spill]]  ;;  %s3683_s3 = smov [#allocation19]  }
 0x1ad   : > { %2898 = vmatpush3.bf16.msra.mxu0 %v3197_v42  ;;  %2917 = vmatprep.subr.bf16.mxu1 %v3677_v41  ;;  %v1183_v53 = vsel %vm1178_vm1, %v3206_v52, 0  ;;  %v3210_v8 = vld [vmem:[#allocation2] sm:$0xff]   ;;  %v3212_v22 = vld [vmem:[#allocation3] sm:$0xff]   ;;  %s4398_s10 = sld [smem:[#allocation46_spill]] }
 0x1ae   : > { %2899 = vmatprep.subr.bf16.mxu0 %v3677_v41  ;;  %v2628_v55 = vld [vmem:[%s4395_s14] ss:$0 sm:$0xff]  ;;  %s4399_s18 = sld [smem:[#allocation48_spill]]  ;;  %s2720_s14 = sshll.u32 %s3647_s1, 1 }
 0x1af   : > { %v3207_v19 = vld [vmem:[#allocation2] sm:$0xff]   ;;  %s4400_s30 = sld [smem:[#allocation50_spill]]  ;;  %s2407_s1 = sshll.u32 %s728_s11, 4  ;;  %s4252_s1 = int_to_ptr.vmem [resolvable:$true] %s2407_s1 }
 0x1b0   : > { %s4401_s8 = sld [smem:[#allocation30_spill]]  ;;  %s3523_s9 = scalar_lea.vmem %s4252_s1, 128 }
 0x1b1   : > { %2900 = vmatpush3.bf16.msra.mxu0 %v3198_v43  ;;  %s4402_s29 = sld [smem:[#allocation51_spill]]  ;;  %p3524_p1 = scmp.ne.s32.totalorder %s4252_s1, %s3523_s9 }
 0x1b2   : > { %2901 = vmatprep.subr.bf16.mxu0 %v3677_v41  ;;  %s4404_s16 = sld [smem:[#allocation53_spill]] }
 0x1b3   : > { %p3525_p5 = pnand %p3524_p1, %p3966_p12 }
 0x1b4   : > { %2918 = vmatpush3.bf16.xpose.msra.mxu1 %v1183_v53 }
 0x1b5   : > { %2902 = vmatpush3.bf16.msra.mxu0 %v3199_v44  ;;  %2923 = vmatprep.subr.bf16.mxu1 %v3677_v41  ;;  %p3526_p3 = pneg %p3525_p5 }
 0x1b6   : > { %2903 = vmatprep.subr.bf16.mxu0 %v3677_v41 }
 0x1b9   : > { %2904 = vmatpush3.bf16.msra.mxu0 %v3200_v47 }
 0x1ba   : > { %2905 = vmatprep.subr.bf16.mxu0 %v3677_v41 }
 0x1bd   : > { %2906 = vmatpush3.bf16.msra.mxu0 %v3201_v48 }
 0x1be   : > { %2907 = vmatprep.subr.bf16.mxu0 %v3677_v41 }
 0x1c1   : > { %2908 = vmatpush3.bf16.msra.mxu0 %v3202_v49 }
 0x1c2   : > { %2909 = vmatprep.subr.bf16.mxu0 %v3677_v41 }
 0x1c5   : > { %2910 = vmatpush3.bf16.msra.mxu0 %v3203_v50 }
 0x1c6   : > { %2939 = vmatprep.subr.bf16.mxu0 %v3677_v41 }
 0x1c8   : > { %2912 = vmatmul.mubr.bf16.vlgmr.msra.gmra.mxu0 %v4083_v51 }
 0x1c9   : > { %2943 = vmatprep.mubr.msk.bf16.mxu0 %vm3678_vm0, %v3677_v41 }
 0x288   : > { %v1156_v54 = vpop.f32.mrf.mxu0 }
 0x289   : > { %v1157_v58 = vadd.f32 %v2628_v55, %v1156_v54 }
 0x28a   : > { %v2913_v56 = vpop.f32.mrf.mxu0 }
 0x28c   : > { %v1159_v57 = vpop.f32.mrf.mxu0 }
 0x28d   : > { %v1160_v59 = vadd.f32 %v2628_v55, %v1159_v57 }
 0x28e   : > { %v2914_v60 = vpop.f32.mrf.mxu0 }
 0x28f   : > { %v4095_v61 = vpack.c.bf16 %v1160_v59, %v1157_v58  ;;  %v3213_v60 = vld [vmem:[#allocation3] sm:$0xff]  }
 0x291   : > { %2920 = vmatmul.mubr.msk.bf16.vlgmr.msra.gmra.mxu1 %vm1178_vm1, %v4095_v61 }
 0x292   : > { %2927 = vmatprep.mubr.msk.bf16.mxu1 %vm3678_vm0, %v3677_v41  ;;  %2924 = vmatpush3.bf16.msra.mxu1 %v3211_v21 }
 0x293   : > { %2925 = vmatprep.subr.bf16.mxu1 %v3677_v41 }
 0x296   : > { %2926 = vmatpush3.bf16.msra.mxu1 %v3212_v22 }
 0x297   : > { %2931 = vmatprep.subr.bf16.mxu1 %v3677_v41 }
 0x351   : > { %v1222_v63 = vpop.f32.mrf.mxu1 }
 0x352   : > { %v1223_v0 = vadd.f32 %v4103_v62, %v1222_v63  ;;  %v3214_v63 = vld [vmem:[#allocation2 + $0x8] sm:$0xff]  }
 0x353   : > { %v2921_v1 = vpop.f32.mrf.mxu1 }
 0x354   : > { %v1229_v2 = vsel %vm1178_vm1, %v1223_v0, -inf }
 0x355   : > { %1230 = vmax.xlane.f32.xlu0 %v1229_v2  ;;  %v1225_v3 = vpop.f32.mrf.mxu1 }
 0x356   : > { %v1226_v4 = vadd.f32 %v4103_v62, %v1225_v3 }
 0x357   : > { %v2922_v5 = vpop.f32.mrf.mxu1 }
 0x358   : > { %v1232_v6 = vsel %vm1178_vm1, %v1226_v4, -inf }
 0x359   : > { %1233 = vmax.xlane.f32.xlu0 %v1232_v6 }
 0x36f   : > { %1342 = vrot.lane.b32.xlu0 %v3209_v7, %s3679_s21 }
 0x373   : > { %1512 = vrot.lane.b32.xlu0 %v3210_v8, %s3680_s13 }
 0x3de   : > { %v1231_v9 = vpop.xlane.xlu0 %1230 }
 0x3df   : > { %v1235_v10 = vsub.f32 %v1223_v0, %v1231_v9  ;;  %v3215_v0 = vld [vmem:[#allocation2] sm:$0xff]  }
 0x3e1   : > { %v1237_v11 = vmul.f32 1.442695, %v1235_v10 }
 0x3e2   : > { %v1234_v12 = vpop.xlane.xlu0 %1233 }
 0x3e3   : > { %3271 = vpow2.f32 %v1237_v11  ;;  %v1236_v13 = vsub.f32 %v1226_v4, %v1234_v12 }
 0x3e5   : > { %v1239_v14 = vmul.f32 1.442695, %v1236_v13  ;;  %v3216_v13 = vld [vmem:[#allocation3 + $0x8] sm:$0xff]  }
 0x3e6   : > { %v1343_v27 = vpop.permute.xlu0 %1342 }
 0x3e7   : > { %3273 = vpow2.f32 %v1239_v14  ;;  %v1351_v30 = vsel %vm1178_vm1, %v1343_v27, 0 }
 0x3ea   : > { %v1513_v37 = vpop.permute.xlu0 %1512 }
 0x3eb   : > { %v1520_v38 = vsel %vm1178_vm1, %v1513_v37, 0 }
 0x3f0   : > { %v3272_v15 = vpop.eup %3271 }
 0x3f1   : > { %v1241_v16 = vsel %vm1178_vm1, %v3272_v15, 0.0 }
 0x3f2   : > { %1242 = vadd.xlane.f32.xlu1 %v1241_v16 }
 0x3f4   : > { %v3274_v17 = vpop.eup %3273 }
 0x3f5   : > { %v1244_v18 = vsel %vm1178_vm1, %v3274_v17, 0.0 }
 0x3f6   : > { %1245 = vadd.xlane.f32.xlu1 %v1244_v18 }
 0x407   : > { %1340 = vrot.lane.b32.xlu1 %v3207_v19, %s3679_s21 }
 0x40b   : > { %1514 = vrot.lane.b32.xlu1 %v3208_v20, %s3680_s13 }
 0x40f   : > { %1328 = vrot.lane.b32.xlu1 %v4095_v61, %s3679_s21 }
 0x413   : > { %1500 = vrot.lane.b32.xlu1 %v4095_v61, %s3680_s13 }
 0x47b   : > { %v1243_v23 = vpop.xlane.xlu1 %1242 }
 0x47c   : > { %3275 = vrcp.f32 %v1243_v23 }
 0x47f   : > { %v1246_v24 = vpop.xlane.xlu1 %1245 }
 0x480   : > { %3277 = vrcp.f32 %v1246_v24 }
 0x483   : > { %v1341_v32 = vpop.permute.xlu1 %1340 }
 0x484   : > { %v1348_v33 = vsel %vm1178_vm1, %v1341_v32, 0 }
 0x487   : > { %v1515_v34 = vpop.permute.xlu1 %1514 }
 0x488   : > { %v1523_v36 = vsel %vm1178_vm1, %v1515_v34, 0  ;;  %v3217_v34 = vld [vmem:[#allocation3 + $0x8] sm:$0xff]  }
 0x489   : > { %v3276_v25 = vpop.eup %3275 }
 0x48a   : > { %v1249_v28 = vmul.f32 %v3276_v25, %v3272_v15 }
 0x48b   : > { %v1329_v35 = vpop.permute.xlu1 %1328 }
 0x48d   : > { %v3278_v26 = vpop.eup %3277 }
 0x48e   : > { %v1250_v29 = vmul.f32 %v3278_v26, %v3274_v17 }
 0x48f   : > { %v1501_v39 = vpop.permute.xlu1 %1500 }
 0x490   : > { %v1251_v31 = vpack.c.bf16 %v1250_v29, %v1249_v28 }
 0x492   : > { %2928 = vmatmul.mubr.msk.bf16.vlgmr.msra.gmra.mxu1 %vm1178_vm1, %v1251_v31 }
 0x493   : > { %2932 = vmatpush3.bf16.xpose.msra.mxu1 %v1351_v30  ;;  %2935 = vmatprep.mubr.msk.bf16.mxu1 %vm3678_vm0, %v3677_v41 }
 0x494   : > { %2933 = vmatprep.subr.bf16.mxu1 %v3677_v41 }
 0x49b   : > { %2934 = vmatpush3.bf16.xpose.msra.mxu1 %v1348_v33 }
 0x49c   : > { %2947 = vmatprep.subr.bf16.mxu1 %v3677_v41 }
 0x4a2   : > { %2936 = vmatmul.mubr.msk.bf16.vlgmr.msra.gmra.mxu1 %vm1178_vm1, %v1329_v35 }
 0x4a3   : > { %2948 = vmatpush3.bf16.xpose.msra.mxu1 %v1523_v36  ;;  %2951 = vmatprep.mubr.msk.bf16.mxu1 %vm3678_vm0, %v3677_v41 }
 0x4a4   : > { %2949 = vmatprep.subr.bf16.mxu1 %v3677_v41 }
 0x4ab   : > { %2950 = vmatpush3.bf16.xpose.msra.mxu1 %v1520_v38 }
 0x4ac   : > { %2955 = vmatprep.subr.bf16.mxu1 %v3677_v41 }
 0x4b2   : > { %2952 = vmatmul.mubr.msk.bf16.vlgmr.msra.gmra.mxu1 %vm1178_vm1, %v1501_v39 }
 0x4b3   : > { %2959 = vmatprep.mubr.msk.bf16.mxu1 %vm3678_vm0, %v3677_v41 }
 0x552   : > { %v1305_v40 = vpop.f32.mrf.mxu1 }
 0x553   : > { %v2734_v42 = vpack.c.bf16 %v1305_v40, %v1305_v40 }
 0x554   : > { %v2929_v43 = vpop.f32.mrf.mxu1 }
 0x555   : > { %1321 = vst.msk [vmem:[#allocation4] sm:$0xf] %vm1320_vm2, %v2734_v42 }
 0x556   : > { %v1308_v44 = vpop.f32.mrf.mxu1 }
 0x557   : > { %v2735_v45 = vpack.c.bf16 %v1308_v44, %v1308_v44 }
 0x558   : > { %v2930_v46 = vpop.f32.mrf.mxu1 }
 0x559   : > { %1322 = vst.msk [vmem:[#allocation4 + $0x4] sm:$0xf] %vm1320_vm2, %v2735_v45 }
 0x562   : > { %v1387_v47 = vpop.f32.mrf.mxu1 }
 0x563   : > { %v1388_v1 = vadd.f32 %v4103_v62, %v1387_v47 }
 0x564   : > { %v2937_v48 = vpop.f32.mrf.mxu1 }
 0x565   : > { %v1394_v2 = vsel %vm1178_vm1, %v1388_v1, -inf }
 0x566   : > { %v1390_v49 = vpop.f32.mrf.mxu1 }
 0x567   : > { %v1391_v20 = vadd.f32 %v4103_v62, %v1390_v49 }
 0x568   : > { %v2938_v50 = vpop.f32.mrf.mxu1 }
 0x569   : > { %v1397_v21 = vsel %vm1178_vm1, %v1391_v20, -inf }
 0x572   : > { %v1559_v52 = vpop.f32.mrf.mxu1 }
 0x573   : > { %v1560_v53 = vadd.f32 %v4103_v62, %v1559_v52 }
 0x574   : > { %v2953_v54 = vpop.f32.mrf.mxu1 }
 0x575   : > { %v1566_v55 = vsel %vm1178_vm1, %v1560_v53, -inf }
 0x576   : > { %1567 = vmax.xlane.f32.xlu0 %v1566_v55  ;;  %v1562_v56 = vpop.f32.mrf.mxu1 }
 0x577   : > { %v1563_v57 = vadd.f32 %v4103_v62, %v1562_v56 }
 0x578   : > { %v2954_v58 = vpop.f32.mrf.mxu1 }
 0x579   : > { %v1569_v59 = vsel %vm1178_vm1, %v1563_v57, -inf }
 0x57a   : > { %1570 = vmax.xlane.f32.xlu1 %v1569_v59 }
 0x58b   : > { %1603 = vrot.lane.b32.xlu1 %v3213_v60, %s3680_s13 }
 0x58f   : > { %1686 = vrot.lane.b32.xlu1 %v3214_v63, %s3681_s6 }
 0x593   : > { %1684 = vrot.lane.b32.xlu1 %v3215_v0, %s3681_s6 }
 0x5b7   : > { %1395 = vmax.xlane.f32.xlu1 %v1394_v2 }
 0x5ff   : > { %v1568_v3 = vpop.xlane.xlu0 %1567 }
 0x600   : > { %v1572_v4 = vsub.f32 %v1560_v53, %v1568_v3  ;;  %v3219_v3 = vld [vmem:[#allocation3 + $0x8] sm:$0xff]  }
 0x602   : > { %v1574_v5 = vmul.f32 1.442695, %v1572_v4  ;;  %v3220_v4 = vld [vmem:[#allocation3] sm:$0xff]  }
 0x603   : > { %v1571_v6 = vpop.xlane.xlu1 %1570 }
 0x604   : > { %3279 = vpow2.f32 %v1574_v5  ;;  %v1573_v7 = vsub.f32 %v1563_v57, %v1571_v6  ;;  %v3218_v5 = vld [vmem:[#allocation3] sm:$0xff]  }
 0x606   : > { %v1576_v8 = vmul.f32 1.442695, %v1573_v7 }
 0x607   : > { %v1604_v14 = vpop.permute.xlu1 %1603 }
 0x608   : > { %3281 = vpow2.f32 %v1576_v8 }
 0x60b   : > { %v1687_v15 = vpop.permute.xlu1 %1686 }
 0x60c   : > { %v1695_v30 = vsel %vm1178_vm1, %v1687_v15, 0 }
 0x60f   : > { %v1685_v16 = vpop.permute.xlu1 %1684 }
 0x610   : > { %v1692_v32 = vsel %vm1178_vm1, %v1685_v16, 0 }
 0x611   : > { %v3280_v9 = vpop.eup %3279 }
 0x612   : > { %v1578_v10 = vsel %vm1178_vm1, %v3280_v9, 0.0 }
 0x613   : > { %1579 = vadd.xlane.f32.xlu0 %v1578_v10 }
 0x615   : > { %v3282_v11 = vpop.eup %3281 }
 0x616   : > { %v1581_v12 = vsel %vm1178_vm1, %v3282_v11, 0.0 }
 0x617   : > { %1582 = vadd.xlane.f32.xlu0 %v1581_v12 }
 0x62d   : > { %1605 = vrot.lane.b32.xlu0 %v3216_v13, %s3680_s13 }
 0x631   : > { %1672 = vrot.lane.b32.xlu0 %v4095_v61, %s3681_s6 }
 0x640   : > { %v1396_v17 = vpop.xlane.xlu1 %1395 }
 0x641   : > { %v1400_v18 = vsub.f32 %v1388_v1, %v1396_v17 }
 0x643   : > { %v1402_v19 = vmul.f32 1.442695, %v1400_v18 }
 0x645   : > { %3283 = vpow2.f32 %v1402_v19 }
 0x650   : > { %1398 = vmax.xlane.f32.xlu0 %v1397_v21 }
 0x652   : > { %v4154_v22 = vpop.eup %3283 }
 0x653   : > { %v1406_v23 = vsel %vm1178_vm1, %v4154_v22, 0.0 }
 0x654   : > { %1407 = vadd.xlane.f32.xlu1 %v1406_v23  ;;  %v3222_v23 = vld [vmem:[#allocation14 + $0x30] sm:$0xff]  }
 0x665   : > { %1433 = vrot.lane.b32.xlu1 %v3217_v34, %s3679_s21 }
 0x69c   : > { %v1580_v24 = vpop.xlane.xlu0 %1579 }
 0x69d   : > { %3285 = vrcp.f32 %v1580_v24  ;;  %v3223_v24 = vld [vmem:[#allocation14 + $0x28] sm:$0xff]  }
 0x6a0   : > { %v1583_v61 = vpop.xlane.xlu0 %1582 }
 0x6a1   : > { %3287 = vrcp.f32 %v1583_v61  ;;  %v3224_v61 = vld [vmem:[#allocation14 + $0x20] sm:$0xff]  }
 0x6a4   : > { %v1606_v25 = vpop.permute.xlu0 %1605 }
 0x6a5   : > { %2956 = vmatpush3.bf16.msra.mxu1 %v1606_v25  ;;  %v3225_v25 = vld [vmem:[#allocation14 + $0x18] sm:$0xff]  }
 0x6a6   : > { %2957 = vmatprep.subr.bf16.mxu1 %v3677_v41 }
 0x6a8   : > { %v1673_v33 = vpop.permute.xlu0 %1672 }
 0x6a9   : > { %2958 = vmatpush3.bf16.msra.mxu1 %v1604_v14 }
 0x6aa   : > { %2963 = vmatprep.subr.bf16.mxu1 %v3677_v41  ;;  %v3286_v26 = vpop.eup %3285 }
 0x6ab   : > { %v1586_v28 = vmul.f32 %v3286_v26, %v3280_v9 }
 0x6ae   : > { %v3288_v27 = vpop.eup %3287 }
 0x6af   : > { %v1587_v29 = vmul.f32 %v3288_v27, %v3282_v11 }
 0x6b1   : > { %v1588_v31 = vpack.c.bf16 %v1587_v29, %v1586_v28  ;;  %v3226_v28 = vld [vmem:[#allocation14 + $0x10] sm:$0xff]  }
 0x6b3   : > { %2960 = vmatmul.mubr.msk.bf16.vlgmr.msra.gmra.mxu1 %vm1178_vm1, %v1588_v31 }
 0x6b4   : > { %2964 = vmatpush3.bf16.xpose.msra.mxu1 %v1695_v30  ;;  %2967 = vmatprep.mubr.msk.bf16.mxu1 %vm3678_vm0, %v3677_v41 }
 0x6b5   : > { %2965 = vmatprep.subr.bf16.mxu1 %v3677_v41 }
 0x6bc   : > { %2966 = vmatpush3.bf16.xpose.msra.mxu1 %v1692_v32 }
 0x6c3   : > { %2968 = vmatmul.mubr.msk.bf16.vlgmr.msra.gmra.mxu1 %vm1178_vm1, %v1673_v33  ;;  %v3227_v33 = vld [vmem:[#allocation14 + $0x8] sm:$0xff]  }
 0x6d9   : > { %v1399_v35 = vpop.xlane.xlu0 %1398 }
 0x6da   : > { %v1401_v38 = vsub.f32 %v1391_v20, %v1399_v35  ;;  %v3228_v35 = vld [vmem:[#allocation14] sm:$0xff]  }
 0x6dc   : > { %v1404_v42 = vmul.f32 1.442695, %v1401_v38 }
 0x6dd   : > { %v1408_v54 = vpop.xlane.xlu1 %1407 }
 0x6de   : > { %3289 = vpow2.f32 %v1404_v42 }
 0x6e1   : > { %v1434_v55 = vpop.permute.xlu1 %1433 }
 0x6e2   : > { %2940 = vmatpush3.bf16.msra.mxu0 %v1434_v55 }
 0x6e3   : > { %2941 = vmatprep.subr.bf16.mxu0 %v3677_v41 }
 0x6eb   : > { %v3290_v52 = vpop.eup %3289 }
 0x6ec   : > { %v1409_v53 = vsel %vm1178_vm1, %v3290_v52, 0.0 }
 0x773   : > { %v4168_v36 = vpop.f32.mrf.mxu1 }
 0x774   : > { %v2738_v31 = vpack.c.bf16 %v4168_v36, %v4168_v36 }
 0x775   : > { %v2961_v37 = vpop.f32.mrf.mxu1 }
 0x777   : > { %v4170_v39 = vpop.f32.mrf.mxu1 }
 0x778   : > { %v2739_v37 = vpack.c.bf16 %v4170_v39, %v4170_v39 }
 0x779   : > { %v2962_v40 = vpop.f32.mrf.mxu1 }
 0x783   : > { %v1731_v43 = vpop.f32.mrf.mxu1 }
 0x784   : > { %v1732_v44 = vadd.f32 %v4103_v62, %v1731_v43 }
 0x785   : > { %v2969_v45 = vpop.f32.mrf.mxu1 }
 0x786   : > { %v1738_v46 = vsel %vm1178_vm1, %v1732_v44, -inf }
 0x787   : > { %1739 = vmax.xlane.f32.xlu0 %v1738_v46  ;;  %v1734_v47 = vpop.f32.mrf.mxu1 }
 0x788   : > { %v1735_v48 = vadd.f32 %v4103_v62, %v1734_v47 }
 0x789   : > { %v2970_v49 = vpop.f32.mrf.mxu1 }
 0x78a   : > { %v1741_v50 = vsel %vm1178_vm1, %v1735_v48, -inf }
 0x78b   : > { %1742 = vmax.xlane.f32.xlu0 %v1741_v50  ;;  %v2670_v50 = vld [vmem:[%s4396_s17] ss:$0 sm:$0xff] }
 0x78f   : > { %1410 = vadd.xlane.f32.xlu0 %v1409_v53 }
 0x810   : > { %v1740_v56 = vpop.xlane.xlu0 %1739 }
 0x811   : > { %v1744_v57 = vsub.f32 %v1732_v44, %v1740_v56 }
 0x813   : > { %v1746_v58 = vmul.f32 1.442695, %v1744_v57  ;;  %v1961_v57 = vunpack.c.h.bf16 %v4083_v51 }
 0x814   : > { %v1743_v59 = vpop.xlane.xlu0 %1742 }
 0x815   : > { %3291 = vpow2.f32 %v1746_v58  ;;  %v1745_v60 = vsub.f32 %v1735_v48, %v1743_v59 }
 0x817   : > { %v1748_v62 = vmul.f32 1.442695, %v1745_v60 }
 0x818   : > { %v1411_v6 = vpop.xlane.xlu0 %1410 }
 0x819   : > { %3293 = vpow2.f32 %v1748_v62 }
 0x81a   : > { %3295 = vrcp.f32 %v1411_v6 }
 0x81b   : > { %3297 = vrcp.f32 %v1408_v54 }
 0x822   : > { %v3292_v63 = vpop.eup %3291 }
 0x823   : > { %v1750_v0 = vsel %vm1178_vm1, %v3292_v63, 0.0 }
 0x824   : > { %1751 = vadd.xlane.f32.xlu1 %v1750_v0  ;;  %v3232_v0 = vld [vmem:[#allocation16 + $0x74] ss:$8 sps:$4 sm:$0xff]  }
 0x825   : > { %2114 = vmatprep.subr.bf16.mxu1 %v3232_v0 }
 0x826   : > { %v3294_v1 = vpop.eup %3293 }
 0x827   : > { %v1753_v2 = vsel %vm1178_vm1, %v3294_v1, 0.0  ;;  %v3296_v8 = vpop.eup %3295 }
 0x828   : > { %1754 = vadd.xlane.f32.xlu0 %v1753_v2  ;;  %v3298_v10 = vpop.eup %3297  ;;  %v1415_v11 = vmul.f32 %v3296_v8, %v3290_v52  ;;  %v1960_v52 = vunpack.c.l.bf16 %v4083_v51  ;;  %v3235_v8 = vld [vmem:[#allocation16 + $0x64] ss:$8 sps:$4 sm:$0xff]  }
 0x829   : > { %v1414_v13 = vmul.f32 %v3298_v10, %v4154_v22  ;;  %v3221_v22 = vld [vmem:[#allocation14 + $0x38] sm:$0xff]  }
 0x82a   : > { %v3238_v10 = vld [vmem:[#allocation16 + $0x54] ss:$8 sps:$4 sm:$0xff]  }
 0x82b   : > { %v1416_v15 = vpack.c.bf16 %v1415_v11, %v1414_v13  ;;  %v3236_v11 = vld [vmem:[#allocation16 + $0x50] ss:$8 sps:$4 sm:$0xff]   ;;  %v3241_v13 = vld [vmem:[#allocation16 + $0x44] ss:$8 sps:$4 sm:$0xff]  }
 0x835   : > { %1777 = vrot.lane.b32.xlu1 %v3219_v3, %s3681_s6 }
 0x839   : > { %1775 = vrot.lane.b32.xlu1 %v3220_v4, %s3681_s6 }
 0x83e   : > { %1431 = vrot.lane.b32.xlu0 %v3218_v5, %s3679_s21 }
 0x8ad   : > { %v1752_v7 = vpop.xlane.xlu1 %1751 }
 0x8ae   : > { %3299 = vrcp.f32 %v1752_v7 }
 0x8b1   : > { %v1755_v9 = vpop.xlane.xlu0 %1754  ;;  %v1778_v14 = vpop.permute.xlu1 %1777 }
 0x8b2   : > { %3301 = vrcp.f32 %v1755_v9  ;;  %v3233_v9 = vld [vmem:[#allocation16 + $0x60] ss:$8 sps:$4 sm:$0xff]  }
 0x8b5   : > { %v1432_v12 = vpop.permute.xlu0 %1431  ;;  %v1776_v16 = vpop.permute.xlu1 %1775 }
 0x8b6   : > { %2942 = vmatpush3.bf16.msra.mxu0 %v1432_v12  ;;  %v3239_v12 = vld [vmem:[#allocation16 + $0x40] ss:$8 sps:$4 sm:$0xff]  }
 0x8b7   : > { %2971 = vmatprep.subr.bf16.mxu0 %v3677_v41 }
 0x8b9   : > { %2944 = vmatmul.mubr.msk.bf16.vlgmr.msra.gmra.mxu0 %vm1178_vm1, %v1416_v15  ;;  %v3242_v15 = vld [vmem:[#allocation16 + $0x30] ss:$8 sps:$4 sm:$0xff]  }
 0x8ba   : > { %2972 = vmatpush3.bf16.msra.mxu0 %v1778_v14  ;;  %2975 = vmatprep.mubr.msk.bf16.mxu0 %vm3678_vm0, %v3677_v41  ;;  %v3244_v14 = vld [vmem:[#allocation16 + $0x34] ss:$8 sps:$4 sm:$0xff]  }
 0x8bb   : > { %2973 = vmatprep.subr.bf16.mxu0 %v3677_v41  ;;  %v3300_v17 = vpop.eup %3299 }
 0x8bc   : > { %v1758_v19 = vmul.f32 %v3300_v17, %v3292_v63  ;;  %v3230_v63 = vld [vmem:[#allocation16 + $0x70] ss:$8 sps:$4 sm:$0xff]   ;;  %v3247_v17 = vld [vmem:[#allocation16 + $0x24] ss:$8 sps:$4 sm:$0xff]  }
 0x8bd   : > { %2115 = vmatpush1.bf16.msra.mxu1 %v3230_v63 }
 0x8be   : > { %2974 = vmatpush3.bf16.msra.mxu0 %v1776_v16  ;;  %2116 = vmatprep.subr.bf16.mxu1 %v3235_v8  ;;  %v3682_v16 = vmov 0  }
 0x8bf   : > { %v3302_v18 = vpop.eup %3301  ;;  %2979 = vmatprep.subr.bf16.mxu0 %v3677_v41  ;;  %2146 = vmatprep.mubr.bf16.mxu1 %v3682_v16 }
 0x8c0   : > { %v1759_v20 = vmul.f32 %v3302_v18, %v3294_v1  ;;  %v3245_v18 = vld [vmem:[#allocation16 + $0x20] ss:$8 sps:$4 sm:$0xff]  }
 0x8c1   : > { %2117 = vmatpush1.bf16.msra.mxu1 %v3233_v9 }
 0x8c2   : > { %v1760_v21 = vpack.c.bf16 %v1759_v20, %v1758_v19  ;;  %2118 = vmatprep.subr.bf16.mxu1 %v3238_v10  ;;  %v3250_v19 = vld [vmem:[#allocation16 + $0x14] ss:$8 sps:$4 sm:$0xff]   ;;  %v3248_v20 = vld [vmem:[#allocation16 + $0x10] ss:$8 sps:$4 sm:$0xff]  }
 0x8c4   : > { %2976 = vmatmul.mubr.msk.bf16.vlgmr.msra.gmra.mxu0 %vm1178_vm1, %v1760_v21  ;;  %v3253_v21 = vld [vmem:[#allocation16 + $0x4] ss:$8 sps:$4 sm:$0xff]  }
 0x8c5   : > { %2995 = vmatprep.mubr.msk.bf16.mxu0 %vm3678_vm0, %v3677_v41  ;;  %2980 = vmatpush3.bf16.msra.mxu0 %v3221_v22  ;;  %v3251_v22 = vld [vmem:[#allocation16] ss:$8 sps:$4 sm:$0xff]  }
 0x8c6   : > { %2981 = vmatprep.subr.bf16.mxu0 %v3677_v41  ;;  %2119 = vmatpush1.bf16.msra.mxu1 %v3236_v11 }
 0x8c7   : > { %2120 = vmatprep.subr.bf16.mxu1 %v3241_v13 }
 0x8c9   : > { %2982 = vmatpush3.bf16.msra.mxu0 %v3222_v23  ;;  %v3254_v23 = vld [vmem:[#allocation17 + $0x78] sm:$0xff]  }
 0x8ca   : > { %2983 = vmatprep.subr.bf16.mxu0 %v3677_v41  ;;  %2121 = vmatpush1.bf16.msra.mxu1 %v3239_v12 }
 0x8cb   : > { %2122 = vmatprep.subr.bf16.mxu1 %v3244_v14  ;;  %v2698_v14 = vld [vmem:[%s4400_s30] ss:$0 sm:$0xff]  ;;  %s3527_s30 = sshll.u32 %s3683_s3, 4  ;;  %s3528_s30 = int_to_ptr.vmem [resolvable:$false] %s3527_s30 }
 0x8cc   : > { %p3530_p8 = scmp.lt.s32.totalorder %s4252_s1, %s3528_s30 }
 0x8cd   : > { %2984 = vmatpush3.bf16.msra.mxu0 %v3223_v24  ;;  %v3255_v24 = vld [vmem:[#allocation17 + $0x38] sm:$0xff]  }
 0x8ce   : > { %2985 = vmatprep.subr.bf16.mxu0 %v3677_v41  ;;  %2123 = vmatpush1.bf16.msra.mxu1 %v3242_v15 }
 0x8cf   : > { %2124 = vmatprep.subr.bf16.mxu1 %v3247_v17 }
 0x8d1   : > { %2986 = vmatpush3.bf16.msra.mxu0 %v3224_v61  ;;  %v3256_v61 = vld [vmem:[#allocation17 + $0x70] sm:$0xff]  }
 0x8d2   : > { %2987 = vmatprep.subr.bf16.mxu0 %v3677_v41  ;;  %2125 = vmatpush1.bf16.msra.mxu1 %v3245_v18 }
 0x8d3   : > { %2126 = vmatprep.subr.bf16.mxu1 %v3250_v19 }
 0x8d5   : > { %2988 = vmatpush3.bf16.msra.mxu0 %v3225_v25  ;;  %v3257_v25 = vld [vmem:[#allocation17 + $0x30] sm:$0xff]  }
 0x8d6   : > { %2989 = vmatprep.subr.bf16.mxu0 %v3677_v41  ;;  %2127 = vmatpush1.bf16.msra.mxu1 %v3248_v20 }
 0x8d7   : > { %2128 = vmatprep.subr.bf16.mxu1 %v3253_v21 }
 0x8d9   : > { %2990 = vmatpush3.bf16.msra.mxu0 %v3226_v28  ;;  %v3260_v28 = vld [vmem:[#allocation17 + $0x60] sm:$0xff]  }
 0x8da   : > { %2991 = vmatprep.subr.bf16.mxu0 %v3677_v41  ;;  %2129 = vmatpush1.bf16.msra.mxu1 %v3251_v22 }
 0x8dd   : > { %2992 = vmatpush3.bf16.msra.mxu0 %v3227_v33 }
 0x8de   : > { %2993 = vmatprep.subr.bf16.mxu0 %v3677_v41 }
 0x8e1   : > { %2994 = vmatpush3.bf16.msra.mxu0 %v3228_v35 }
 0x8e2   : > { %2833 = vmatprep.subr.bf16.mxu0 %v3254_v23 }
 0x979   : > { %v1474_v26 = vpop.f32.mrf.mxu0 }
 0x97a   : > { %v2736_v27 = vpack.c.bf16 %v1474_v26, %v1474_v26  ;;  %v3258_v26 = vld [vmem:[#allocation17 + $0x68] sm:$0xff]  }
 0x97b   : > { %v2945_v29 = vpop.f32.mrf.mxu0 }
 0x97c   : > { %1487 = vrot.lane.b32.xlu1 %v2736_v27, %s3681_s6  ;;  %v3259_v27 = vld [vmem:[#allocation17 + $0x28] sm:$0xff]   ;;  %v3261_v29 = vld [vmem:[#allocation17 + $0x20] sm:$0xff]  }
 0x97d   : > { %v1477_v30 = vpop.f32.mrf.mxu0 }
 0x97e   : > { %v2737_v32 = vpack.c.bf16 %v1477_v30, %v1477_v30  ;;  %v3262_v30 = vld [vmem:[#allocation17 + $0x58] sm:$0xff]  }
 0x97f   : > { %v2946_v34 = vpop.f32.mrf.mxu0 }
 0x980   : > { %1659 = vrot.lane.b32.xlu1 %v2738_v31, %s3680_s13  ;;  %1489 = vrot.lane.b32.xlu0 %v2737_v32, %s3681_s6  ;;  %v3263_v31 = vld [vmem:[#allocation17 + $0x18] sm:$0xff]  }
 0x984   : > { %1661 = vrot.lane.b32.xlu0 %v2739_v37, %s3680_s13  ;;  %v1818_v38 = vpop.f32.mrf.mxu0 }
 0x985   : > { %v2740_v36 = vpack.c.bf16 %v1818_v38, %v1818_v38 }
 0x986   : > { %v2977_v40 = vpop.f32.mrf.mxu0 }
 0x987   : > { %1831 = vrot.lane.b32.xlu1 %v2740_v36, %s3679_s21 }
 0x988   : > { %v1821_v42 = vpop.f32.mrf.mxu0 }
 0x989   : > { %v2741_v43 = vpack.c.bf16 %v1821_v42, %v1821_v42  ;;  %v2680_v42 = vld [vmem:[%s4397_s24] ss:$0 sm:$0xff]  ;;  %s4403_s24 = sld [smem:[#allocation52_spill]] }
 0x98a   : > { %v2978_v44 = vpop.f32.mrf.mxu0 }
 0x98b   : > { %1833 = vrot.lane.b32.xlu0 %v2741_v43, %s3679_s21  ;;  %s2721_s21 = sshll.u32 %s4401_s8, 2  ;;  %s3529_s8 = scalar_lea.vmem %s3528_s30, 256 }
 0x98c   : > { %s2404_s17 = sadd.s32 %s2721_s21, %s2720_s14  ;;  %p3531_p2 = scmp.lt.s32.totalorder %s3529_s8, %s3523_s9 }
 0x98d   : > { %s2722_s23 = sshll.u32 %s2404_s17, 6 }
 0x98e   : > { %s4250_s15 = scalar_lea.hbm %s4404_s16, %s2722_s23  ;;  %p3532_p9 = por %p3531_p2, %p3530_p8 }
 0x990   : > { %p3533_p10 = pnand %p3532_p9, %p3526_p3 }
 0x9ee   : > { %v1488_v45 = vpop.permute.xlu1 %1487 }
 0x9ef   : > { %1494 = vst.msk [vmem:[#allocation4] sm:$0xf] %vm1493_vm3, %v1488_v45 }
 0x9f2   : > { %v1660_v39 = vpop.permute.xlu1 %1659  ;;  %v1490_v46 = vpop.permute.xlu0 %1489 }
 0x9f3   : > { %1666 = vst.msk [vmem:[#allocation4] sm:$0xf] %vm1665_vm4, %v1660_v39  ;;  %v2681_v39 = vld [vmem:[%s4398_s10] ss:$0 sm:$0xff] }
 0x9f4   : > { %1495 = vst.msk [vmem:[#allocation4 + $0x4] sm:$0xf] %vm1493_vm3, %v1490_v46 }
 0x9f6   : > { %v1662_v41 = vpop.permute.xlu0 %1661 }
 0x9f7   : > { %1667 = vst.msk [vmem:[#allocation4 + $0x4] sm:$0xf] %vm1665_vm4, %v1662_v41 }
 0x9f9   : > { %v1832_v47 = vpop.permute.xlu1 %1831 }
 0x9fa   : > { %1838 = vst.msk [vmem:[#allocation4] sm:$0xf] %vm1837_vm5, %v1832_v47 }
 0x9fd   : > { %v1834_v48 = vpop.permute.xlu0 %1833 }
 0x9fe   : > { %1839 = vst.msk [vmem:[#allocation4 + $0x4] sm:$0xf] %vm1837_vm5, %v1834_v48 }
 0xa05   : > { %v3229_v49 = vld [vmem:[#allocation4] sm:$0xff]  }
 0xa06   : > { %2996 = vmatmul.mubr.bf16.vlgmr.msra.gmra.mxu0 %v3229_v49  ;;  %v3264_v49 = vld [vmem:[#allocation17 + $0x50] sm:$0xff]  }
 0xa07   : > { %2834 = vmatpush3.bf16.msra.mxu0 %v3255_v24 }
 0xa08   : > { %2835 = vmatprep.subr.bf16.mxu0 %v3256_v61 }
 0xa0b   : > { %2836 = vmatpush3.bf16.msra.mxu0 %v3257_v25 }
 0xa0c   : > { %2837 = vmatprep.subr.bf16.mxu0 %v3258_v26 }
 0xa0f   : > { %2838 = vmatpush3.bf16.msra.mxu0 %v3259_v27 }
 0xa10   : > { %2839 = vmatprep.subr.bf16.mxu0 %v3260_v28 }
 0xa13   : > { %2840 = vmatpush3.bf16.msra.mxu0 %v3261_v29 }
 0xa14   : > { %2841 = vmatprep.subr.bf16.mxu0 %v3262_v30 }
 0xa17   : > { %2842 = vmatpush3.bf16.msra.mxu0 %v3263_v31 }
 0xa18   : > { %2843 = vmatprep.subr.bf16.mxu0 %v3264_v49 }
 0xac6   : > { %v1953_v53 = vpop.f32.mrf.mxu0 }
 0xac7   : > { %v1954_v54 = vadd.f32 %v2670_v50, %v1953_v53  ;;  %v3267_v53 = vld [vmem:[#allocation17 + $0x8] sm:$0xff]  }
 0xac8   : > { %v2997_v55 = vpop.f32.mrf.mxu0 }
 0xac9   : > { %v1962_v56 = vadd.f32 %v1960_v52, %v1954_v54  ;;  %v3266_v52 = vld [vmem:[#allocation17 + $0x48] sm:$0xff]   ;;  %v3268_v54 = vld [vmem:[#allocation17 + $0x40] sm:$0xff]  }
 0xaca   : > { %v1956_v58 = vpop.f32.mrf.mxu0  ;;  %v3269_v55 = vld [vmem:[#allocation17] sm:$0xff]  }
 0xacb   : > { %v1957_v59 = vadd.f32 %v2670_v50, %v1956_v58  ;;  %1966 = vadd.xlane.f32.xlu1 %v1962_v56  ;;  %v3265_v50 = vld [vmem:[#allocation17 + $0x10] sm:$0xff]  }
 0xacc   : > { %v2998_v60 = vpop.f32.mrf.mxu0  ;;  %2844 = vmatpush3.bf16.msra.mxu0 %v3265_v50 }
 0xacd   : > { %v1963_v62 = vadd.f32 %v1961_v57, %v1957_v59  ;;  %2845 = vmatprep.subr.bf16.mxu0 %v3266_v52  ;;  %v2022_v60 = vld [vmem:[%s4399_s18] sm:$0x3]  ;;  %s4258_s18 = scalar_lea.sflag [#allocation7], %s726_s20 }
 0xacf   : > { %1968 = vadd.xlane.f32.xlu0 %v1963_v62 }
 0xad0   : > { %2846 = vmatpush3.bf16.msra.mxu0 %v3267_v53 }
 0xad1   : > { %2847 = vmatprep.subr.bf16.mxu0 %v3268_v54 }
 0xad4   : > { %2848 = vmatpush3.bf16.msra.mxu0 %v3269_v55 }
 0xb54   : > { %v1967_v1 = vpop.xlane.xlu1 %1966 }
 0xb55   : > { %v1971_v2 = vmul.f32 0.0078125, %v1967_v1 }
 0xb57   : > { %v4215_v3 = vsub.f32 %v1962_v56, %v1971_v2  ;;  %v2024_v56 = vlaneseq }
 0xb58   : > { %v1969_v4 = vpop.xlane.xlu0 %1968 }
 0xb59   : > { %v1972_v5 = vmul.f32 0.0078125, %v1969_v4  ;;  %v1975_v6 = vmul.f32 %v4215_v3, %v4215_v3  ;;  %v2025_v57 = vshrl.u32 %v2024_v56, 7 }
 0xb5b   : > { %v4219_v51 = vsub.f32 %v1963_v62, %v1972_v5  ;;  %1977 = vadd.xlane.f32.xlu0 %v1975_v6  ;;  %v2030_v58 = vsub.s32 1, %v2025_v57  ;;  %v2026_v59 = vsub.s32 0, %v2025_v57 }
 0xb5d   : > { %v1976_v7 = vmul.f32 %v4219_v51, %v4219_v51  ;;  %v2031_v63 = vrot.slane %v2022_v60, %v2030_v58  ;;  %v2027_v0 = vrot.slane %v2022_v60, %v2026_v59 }
 0xb5f   : > { %1979 = vadd.xlane.f32.xlu0 %v1976_v7 }
 0xbe4   : > { %v1978_v32 = vpop.xlane.xlu0 %1977 }
 0xbe5   : > { %v1981_v33 = vmul.f32 0.0078125, %v1978_v32 }
 0xbe7   : > { %v1983_v34 = vadd.f32 1e-05, %v1981_v33 }
 0xbe8   : > { %v1980_v35 = vpop.xlane.xlu0 %1979 }
 0xbe9   : > { %3303 = vrsqrt.f32 %v1983_v34  ;;  %v1982_v37 = vmul.f32 0.0078125, %v1980_v35 }
 0xbeb   : > { %v1984_v38 = vadd.f32 1e-05, %v1982_v37 }
 0xbed   : > { %3305 = vrsqrt.f32 %v1984_v38 }
 0xbf6   : > { %v3304_v36 = vpop.eup %3303 }
 0xbf7   : > { %v1987_v40 = vmul.f32 %v3304_v36, %v4215_v3 }
 0xbf9   : > { %v1995_v45 = vmul.f32 %v2680_v42, %v1987_v40  ;;  %v2715_v40 = vld [vmem:[%s4402_s29] ss:$0 sm:$0xff] }
 0xbfa   : > { %v3306_v43 = vpop.eup %3305 }
 0xbfb   : > { %v1988_v44 = vmul.f32 %v3306_v43, %v4219_v51  ;;  %v2003_v41 = vadd.f32 %v2681_v39, %v1995_v45  ;;  %v2716_v45 = vld [vmem:[%s4403_s24] ss:$0 sm:$0xff] }
 0xbfd   : > { %v1996_v46 = vmul.f32 %v2680_v42, %v1988_v44 }
 0xbff   : > { %v2004_v47 = vadd.f32 %v2681_v39, %v1996_v46 }
 0xc01   : > { %v2005_v48 = vpack.c.bf16 %v2004_v47, %v2003_v41 }
 0xc03   : > { %2147 = vmatmul.mubr.bf16.vlgmr.msra.gmra.mxu1 %v2005_v48 }
 0xcc3   : > { %v2148_v62 = vpop.f32.mrf.mxu1 }
 0xcc4   : > { %v2149_v5 = vadd.f32 %v2148_v62, %v2027_v0 }
 0xcc5   : > { %v2150_v1 = vpop.f32.mrf.mxu1 }
 0xcc6   : > { %v2151_v3 = vadd.f32 %v2150_v1, %v2031_v63  ;;  %v2157_v10 = vmax.f32 %v2149_v5, 0.0 }
 0xcc7   : > { %v2152_v2 = vpop.f32.mrf.mxu1 }
 0xcc8   : > { %v2153_v4 = vadd.f32 %v2152_v2, %v2027_v0  ;;  %v2158_v8 = vmax.f32 %v2151_v3, 0.0 }
 0xcc9   : > { %v2154_v6 = vpop.f32.mrf.mxu1 }
 0xcca   : > { %v2155_v51 = vadd.f32 %v2154_v6, %v2031_v63  ;;  %v2159_v7 = vmax.f32 %v2153_v4, 0.0 }
 0xccc   : > { %v2160_v9 = vmax.f32 %v2155_v51, 0.0  ;;  %v2161_v12 = vpack.c.bf16 %v2159_v7, %v2157_v10 }
 0xcce   : > { %v2162_v11 = vpack.c.bf16 %v2160_v9, %v2158_v8 }
 0xcd0   : > { %2330 = vmatprep.mubr.bf16.mxu0 %v2162_v11 }
 0xcd1   : > { %2331 = vmatmul.mubr.bf16.vlgmr.msra.gmra.mxu0 %v2161_v12 }
 0xd91   : > { %v2849_v13 = vpop.f32.mrf.mxu0 }
 0xd93   : > { %v2850_v15 = vpop.f32.mrf.mxu0 }
 0xd94   : > { %v2851_v16 = vadd.f32 %v2850_v15, %v2849_v13 }
 0xd95   : > { %v2852_v17 = vpop.f32.mrf.mxu0 }
 0xd96   : > { %v2333_v18 = vadd.f32 %v2851_v16, %v2698_v14 }
 0xd97   : > { %v2853_v19 = vpop.f32.mrf.mxu0 }
 0xd98   : > { %v2854_v20 = vadd.f32 %v2853_v19, %v2852_v17  ;;  %v2339_v21 = vadd.f32 %v2333_v18, %v2003_v41 }
 0xd9a   : > { %v2336_v22 = vadd.f32 %v2854_v20, %v2698_v14  ;;  %2343 = vadd.xlane.f32.xlu1 %v2339_v21 }
 0xd9c   : > { %v2340_v23 = vadd.f32 %v2336_v22, %v2004_v47 }
 0xd9e   : > { %2345 = vadd.xlane.f32.xlu0 %v2340_v23 }
 0xe23   : > { %v2344_v24 = vpop.xlane.xlu1 %2343 }
 0xe24   : > { %v2347_v61 = vmul.f32 0.0078125, %v2344_v24 }
 0xe26   : > { %v2349_v25 = vsub.f32 %v2339_v21, %v2347_v61 }
 0xe27   : > { %v2346_v26 = vpop.xlane.xlu0 %2345 }
 0xe28   : > { %v2348_v27 = vmul.f32 0.0078125, %v2346_v26  ;;  %v2351_v28 = vmul.f32 %v2349_v25, %v2349_v25 }
 0xe2a   : > { %v2350_v29 = vsub.f32 %v2340_v23, %v2348_v27  ;;  %2353 = vadd.xlane.f32.xlu1 %v2351_v28 }
 0xe2c   : > { %v2352_v30 = vmul.f32 %v2350_v29, %v2350_v29 }
 0xe2e   : > { %2355 = vadd.xlane.f32.xlu0 %v2352_v30 }
 0xeb3   : > { %v2354_v31 = vpop.xlane.xlu1 %2353 }
 0xeb4   : > { %v2357_v32 = vmul.f32 0.0078125, %v2354_v31 }
 0xeb6   : > { %v2359_v33 = vadd.f32 1e-05, %v2357_v32 }
 0xeb7   : > { %v2356_v34 = vpop.xlane.xlu0 %2355 }
 0xeb8   : > { %3307 = vrsqrt.f32 %v2359_v33  ;;  %v2358_v35 = vmul.f32 0.0078125, %v2356_v34 }
 0xeba   : > { %v2360_v37 = vadd.f32 1e-05, %v2358_v35 }
 0xebc   : > { %3309 = vrsqrt.f32 %v2360_v37 }
 0xec5   : > { %v3308_v38 = vpop.eup %3307 }
 0xec6   : > { %v2363_v36 = vmul.f32 %v3308_v38, %v2349_v25 }
 0xec8   : > { %v2371_v44 = vmul.f32 %v2715_v40, %v2363_v36 }
 0xec9   : > { %v3310_v42 = vpop.eup %3309 }
 0xeca   : > { %v2364_v43 = vmul.f32 %v3310_v42, %v2350_v29  ;;  %v2379_v46 = vadd.f32 %v2716_v45, %v2371_v44 }
 0xecc   : > { %v2372_v39 = vmul.f32 %v2715_v40, %v2364_v43 }
 0xece   : > { %v2380_v41 = vadd.f32 %v2716_v45, %v2372_v39 }
 0xed0   : > { %v2767_v47 = vpack.c.bf16 %v2380_v41, %v2379_v46 }
 0xed2   : > { %2768 = vst [vmem:[%s728_s11] sm:$0xff] %v2767_v47  }
 0xed3   : > { %3536 = shalt.err (!%p3533_p10)
}
 0xed4   : > { %s3537_s20 = scalar_lea.hbm %s4250_s15, 128  ;;  %s3541_s14 = scalar_lea.hbm %s4404_s16, 512 }
 0xed5   : > { %p3538_p13 = scmp.ne.s32.totalorder %s4250_s15, %s3537_s20  ;;  %p3542_p6 = scmp.lt.s32.totalorder %s4250_s15, %s4404_s16 }
 0xed6   : > { %p3543_p4 = scmp.lt.s32.totalorder %s3541_s14, %s3537_s20 }
 0xed7   : > { %p3539_p11 = pnand %p3538_p13, %p3966_p12 }
 0xed8   : > { %p3544_p1 = por %p3543_p4, %p3542_p6 }
 0xed9   : > { %p3540_p7 = pneg %p3539_p11 }
 0xedb   : > { %p3545_p5 = pnand %p3544_p1, %p3540_p7 }
 0xedd   : > { %3548 = shalt.err (!%p3545_p5)
}
 0xede   : > { %s3684_s12 = smov 4  }
 0xedf   : > { %3027 = dma.vmem_to_hbm [thread:$0]  (%p3966_p12), %s4252_s1, 128, %s4250_s15, %s4258_s18, %s3680_s13, %s3680_s13, %s3684_s12  }
 0xee0 PF: > { %s4405_s29 = sld [smem:[#allocation27_spill]]  ;;  %p3072_p3 = scmp.ge.s32.totalorder %s3663_s2, 2 }
 0xee2   : > { %p3056_p8 = pnand %p3072_p3, %p3976_p0 }
 0xee4   : > { %p3057_p2 = pneg %p3056_p8 }
 0xee6   : > { %s2422_s27 = sand.u32 1, %s4405_s29  }
 0xee7   : > { %s2423_s19 = scalar_lea.sflag [#allocation7], %s2422_s27 }
 0xee8   : > { %3618 = dma.done.wait (%p3057_p2), %s2423_s19, 128  }
 0xee9   : > { %3620 = vsyncadd (%p3057_p2), %s2423_s19, 4294967168  ;;  %s40_s2 = sadd.s32 1, %s3663_s2   ;;  %s4407_s4 = sld [smem:[#allocation28_spill]] }
 0xeea   : > { %p37_p9 = scmp.ge.s32.totalorder %s40_s2, 6   ;;  %s4408_s29 = sld [smem:[#allocation35_spill]] }
 0xeeb   : > { %s4409_s13 = sld [smem:[#allocation29_spill]]  ;;  %s4414_s27 = smov %s3627_s28 }
 0xeec   : > { %s4410_s19 = sld [smem:[#allocation34_spill]]  ;;  %s4416_s30 = smov %s3639_s0 }
 0xeed   : > { %s4411_s1 = sld [smem:[#allocation31_spill]]  ;;  %s4418_s20 = smov %s3659_s22 }
 0xeee   : > { %s4412_s21 = sld [smem:[#allocation32_spill]] }
 0xeef   : > { %s4413_s24 = sld [smem:[#allocation33_spill]]  ;;  %s4415_s28 = smov %s4407_s4 }
 0xef1   : > { %s4417_s0 = smov %s4409_s13  ;;  %39 = sbr.rel (!%p37_p9) target bundleno = 32 (0x20), region = 179 }
 0xef5   : > { %s4419_s22 = smov %s4413_s24 }
 0xef6   :  { %2428 = vsyncpa [#allocation6], 1 }
 0xef7   :  { %2430 = vsyncpa [#allocation6 + $0x1], 1 }
 0xef8   :  { %2431 = vsyncpa [#allocation9], 1 }
 0xef9   :  { %2433 = vsyncpa [#allocation9 + $0x1], 1 }
 0xefa   :  { %2434 = vsyncpa [#allocation12], 1 }
 0xefb   :  { %2435 = vsyncpa [#allocation15], 1 }
 0xefc   :  { %2436 = vsyncpa [#allocation18], 1 }
 0xefd   :  { %2437 = vsyncpa [#allocation7], 1 }
 0xefe   :  { %2439 = vsyncpa [#allocation7 + $0x1], 1 }

</bundles_post_ra>
